<compile_context>
chip_gen: v7x
topology: tpu7x:2x2x1
jax: 0.10.0
libtpu: 0.0.40
codegen_flags: <defaults>
</compile_context>

<pallas_src>
import functools
import math

import jax
import jax.numpy as jnp
from jax import lax
from jax.experimental import pallas as pl
from jax.experimental.pallas import tpu as pltpu

NEG_INF = -1e9
LN_EPS = 1e-5                     # PyTorch nn.LayerNorm default
MATMUL_DTYPE = jnp.bfloat16       # MXU operand dtype (f32 accumulation)


# ---------------------------------------------------------------------------
# In-kernel building blocks
# ---------------------------------------------------------------------------

def _layernorm(y, gamma, beta):
    mu = jnp.mean(y, axis=-1, keepdims=True)
    var = jnp.mean(jnp.square(y - mu), axis=-1, keepdims=True)
    return (y - mu) * lax.rsqrt(var + LN_EPS) * gamma + beta


def _mha_heads(x_q, x_kv, add_bias, w_ref, b_ref, num_heads):
    """Multi-head attention with all heads batched in one einsum pair.

    x_q: (Tq, D) f32, x_kv: (Tk, D) f32, add_bias broadcastable to (Tq, Tk).
    w_ref: (1, 4, D, D) [Wq, Wk, Wv, Wo] (scale folded into Wq),
    b_ref: (1, 4, 1, D) [bq, bk, bv, bo] (scale folded into bq).
    Returns (Tq, D) f32 — the output-projected attention result.
    """
    tq, d_model = x_q.shape
    tk = x_kv.shape[0]
    dk = d_model // num_heads

    xq = x_q.astype(MATMUL_DTYPE)
    xkv = x_kv.astype(MATMUL_DTYPE)

    q = jnp.dot(xq, w_ref[0, 0], preferred_element_type=jnp.float32) + b_ref[0, 0]
    k = jnp.dot(xkv, w_ref[0, 1], preferred_element_type=jnp.float32) + b_ref[0, 1]
    v = jnp.dot(xkv, w_ref[0, 2], preferred_element_type=jnp.float32) + b_ref[0, 2]

    # (T, D) -> (H, T, dk), heads batched (no per-head lane slicing).
    qh = q.reshape(tq, num_heads, dk).transpose(1, 0, 2).astype(MATMUL_DTYPE)
    kh = k.reshape(tk, num_heads, dk).transpose(1, 0, 2).astype(MATMUL_DTYPE)
    vh = v.reshape(tk, num_heads, dk).transpose(1, 0, 2).astype(MATMUL_DTYPE)

    s = jnp.einsum('hqd,hkd->hqk', qh, kh,
                   preferred_element_type=jnp.float32)               # (H, Tq, Tk)
    s = s + add_bias                                                 # additive mask

    # Softmax in f32 (exact normalization).
    # TODO(synk): fully-masked rows return the mean of V instead of PyTorch's
    # NaN; not hit by standard padding/causal masks.
    m = jnp.max(s, axis=-1, keepdims=True)
    p = jnp.exp(s - m)
    p = p / jnp.sum(p, axis=-1, keepdims=True)

    o = jnp.einsum('hqk,hkd->hqd', p.astype(MATMUL_DTYPE), vh,
                   preferred_element_type=jnp.float32)               # (H, Tq, dk)
    o = o.transpose(1, 0, 2).reshape(tq, d_model)                    # (Tq, D)

    # Single output projection over the full D (not per-head folds).
    return jnp.dot(o.astype(MATMUL_DTYPE), w_ref[0, 3],
                   preferred_element_type=jnp.float32) + b_ref[0, 3]


def _ffn(x, w1_ref, b1_ref, w2_ref, b2_ref):
    h = jnp.dot(x.astype(MATMUL_DTYPE), w1_ref[0],
                preferred_element_type=jnp.float32) + b1_ref[0]
    h = jnp.maximum(h, 0.0)
    return jnp.dot(h.astype(MATMUL_DTYPE), w2_ref[0],
                   preferred_element_type=jnp.float32) + b2_ref[0]


# ---------------------------------------------------------------------------
# Fused stack kernels (whole encoder / decoder in one pallas_call each)
# ---------------------------------------------------------------------------

def _encoder_stack_kernel(src_ref, keep_ref, aw_ref, ab_ref,
                          w1_ref, b1_ref, w2_ref, b2_ref, lg_ref, lb_ref,
                          o_ref, x_sc, *, num_heads):
    """Grid = (batch, layer).  Activation stays resident in x_sc across layers."""
    l = pl.program_id(1)

    @pl.when(l == 0)
    def _():
        x_sc[...] = src_ref[0]                                       # (S, D)

    x = x_sc[...]

    # Key-padding bias built in-kernel from the (1, S) keep mask (1=valid).
    pad_bias = (1.0 - keep_ref[0]) * NEG_INF                         # (1, S)

    attn = _mha_heads(x, x, pad_bias, aw_ref, ab_ref, num_heads)
    x = _layernorm(x + attn, lg_ref[0, 0], lb_ref[0, 0])
    y = _ffn(x, w1_ref, b1_ref, w2_ref, b2_ref)
    x = _layernorm(x + y, lg_ref[0, 1], lb_ref[0, 1])

    x_sc[...] = x

    @pl.when(l == pl.num_programs(1) - 1)
    def _():
        o_ref[0] = x


def _decoder_stack_kernel(tgt_ref, enc_ref, tbias_ref, tkeep_ref, skeep_ref,
                          sw_ref, sb_ref, cw_ref, cb_ref,
                          w1_ref, b1_ref, w2_ref, b2_ref, lg_ref, lb_ref,
                          o_ref, x_sc, *, num_heads):
    """Grid = (batch, layer).  Self-attn + cross-attn + FFN fused per step."""
    l = pl.program_id(1)

    @pl.when(l == 0)
    def _():
        x_sc[...] = tgt_ref[0]                                       # (T, D)

    x = x_sc[...]
    enc = enc_ref[0]                                                 # (S, D)

    self_bias = tbias_ref[0] + (1.0 - tkeep_ref[0]) * NEG_INF        # (T,T)+(1,T)
    x = _layernorm(x + _mha_heads(x, x, self_bias, sw_ref, sb_ref, num_heads),
                   lg_ref[0, 0], lb_ref[0, 0])

    cross_bias = (1.0 - skeep_ref[0]) * NEG_INF                      # (1, S)
    x = _layernorm(x + _mha_heads(x, enc, cross_bias, cw_ref, cb_ref, num_heads),
                   lg_ref[0, 1], lb_ref[0, 1])

    y = _ffn(x, w1_ref, b1_ref, w2_ref, b2_ref)
    x = _layernorm(x + y, lg_ref[0, 2], lb_ref[0, 2])

    x_sc[...] = x

    @pl.when(l == pl.num_programs(1) - 1)
    def _():
        o_ref[0] = x


# ---------------------------------------------------------------------------
# Pallas wrappers
# ---------------------------------------------------------------------------

def encoder_forward(src, src_keep, p, nhead):
    B, S, D = src.shape
    L = p["attn_w"].shape[0]
    F = p["w1"].shape[-1]
    kernel = functools.partial(_encoder_stack_kernel, num_heads=nhead)
    return pl.pallas_call(
        kernel,
        grid=(B, L),
        in_specs=[
            pl.BlockSpec((1, S, D), lambda b, l: (b, 0, 0)),          # src
            pl.BlockSpec((1, 1, S), lambda b, l: (b, 0, 0)),          # keep mask
            pl.BlockSpec((1, 4, D, D), lambda b, l: (l, 0, 0, 0)),    # attn W
            pl.BlockSpec((1, 4, 1, D), lambda b, l: (l, 0, 0, 0)),    # attn b
            pl.BlockSpec((1, D, F), lambda b, l: (l, 0, 0)),          # ffn w1
            pl.BlockSpec((1, 1, F), lambda b, l: (l, 0, 0)),          # ffn b1
            pl.BlockSpec((1, F, D), lambda b, l: (l, 0, 0)),          # ffn w2
            pl.BlockSpec((1, 1, D), lambda b, l: (l, 0, 0)),          # ffn b2
            pl.BlockSpec((1, 2, 1, D), lambda b, l: (l, 0, 0, 0)),    # ln gamma
            pl.BlockSpec((1, 2, 1, D), lambda b, l: (l, 0, 0, 0)),    # ln beta
        ],
        out_specs=pl.BlockSpec((1, S, D), lambda b, l: (b, 0, 0)),
        out_shape=jax.ShapeDtypeStruct((B, S, D), jnp.float32),
        scratch_shapes=[pltpu.VMEM((S, D), jnp.float32)],
        compiler_params=pltpu.CompilerParams(
            dimension_semantics=("parallel", "arbitrary")),
    )(src, src_keep, p["attn_w"], p["attn_b"],
      p["w1"], p["b1"], p["w2"], p["b2"], p["ln_g"], p["ln_b"])


def decoder_forward(tgt, enc_out, tgt_bias, tgt_keep, src_keep, p, nhead):
    B, T, D = tgt.shape
    S = enc_out.shape[1]
    L = p["self_w"].shape[0]
    F = p["w1"].shape[-1]
    kernel = functools.partial(_decoder_stack_kernel, num_heads=nhead)
    return pl.pallas_call(
        kernel,
        grid=(B, L),
        in_specs=[
            pl.BlockSpec((1, T, D), lambda b, l: (b, 0, 0)),          # tgt
            pl.BlockSpec((1, S, D), lambda b, l: (b, 0, 0)),          # enc_out
            pl.BlockSpec((1, T, T), lambda b, l: (0, 0, 0)),          # tgt_mask bias
            pl.BlockSpec((1, 1, T), lambda b, l: (b, 0, 0)),          # tgt keep
            pl.BlockSpec((1, 1, S), lambda b, l: (b, 0, 0)),          # src keep
            pl.BlockSpec((1, 4, D, D), lambda b, l: (l, 0, 0, 0)),    # self W
            pl.BlockSpec((1, 4, 1, D), lambda b, l: (l, 0, 0, 0)),    # self b
            pl.BlockSpec((1, 4, D, D), lambda b, l: (l, 0, 0, 0)),    # cross W
            pl.BlockSpec((1, 4, 1, D), lambda b, l: (l, 0, 0, 0)),    # cross b
            pl.BlockSpec((1, D, F), lambda b, l: (l, 0, 0)),          # ffn w1
            pl.BlockSpec((1, 1, F), lambda b, l: (l, 0, 0)),          # ffn b1
            pl.BlockSpec((1, F, D), lambda b, l: (l, 0, 0)),          # ffn w2
            pl.BlockSpec((1, 1, D), lambda b, l: (l, 0, 0)),          # ffn b2
            pl.BlockSpec((1, 3, 1, D), lambda b, l: (l, 0, 0, 0)),    # ln gamma
            pl.BlockSpec((1, 3, 1, D), lambda b, l: (l, 0, 0, 0)),    # ln beta
        ],
        out_specs=pl.BlockSpec((1, T, D), lambda b, l: (b, 0, 0)),
        out_shape=jax.ShapeDtypeStruct((B, T, D), jnp.float32),
        scratch_shapes=[pltpu.VMEM((T, D), jnp.float32)],
        compiler_params=pltpu.CompilerParams(
            dimension_semantics=("parallel", "arbitrary")),
    )(tgt, enc_out, tgt_bias, tgt_keep, src_keep,
      p["self_w"], p["self_b"], p["cross_w"], p["cross_b"],
      p["w1"], p["b1"], p["w2"], p["b2"], p["ln_g"], p["ln_b"])


# ---------------------------------------------------------------------------
# Parameters (stacked per layer along a leading axis)
# ---------------------------------------------------------------------------

def _rand(key, shape):
    return jax.random.normal(key, shape, jnp.float32) * 0.02


def _init_mha_stack(key, n_layers, d_model, num_heads):
    ks = jax.random.split(key, 8)
    inv = 1.0 / math.sqrt(d_model // num_heads)        # fold 1/sqrt(dk) into Q
    wq = _rand(ks[0], (n_layers, d_model, d_model)) * inv
    wk = _rand(ks[1], (n_layers, d_model, d_model))
    wv = _rand(ks[2], (n_layers, d_model, d_model))
    wo = _rand(ks[3], (n_layers, d_model, d_model))
    bq = _rand(ks[4], (n_layers, 1, d_model)) * inv
    bk = _rand(ks[5], (n_layers, 1, d_model))
    bv = _rand(ks[6], (n_layers, 1, d_model))
    bo = _rand(ks[7], (n_layers, 1, d_model))
    w = jnp.stack([wq, wk, wv, wo], axis=1).astype(MATMUL_DTYPE)   # (L, 4, D, D)
    b = jnp.stack([bq, bk, bv, bo], axis=1)                        # (L, 4, 1, D)
    return w, b


def _init_ffn_stack(key, n_layers, d_model, d_ff):
    ks = jax.random.split(key, 4)
    return {
        "w1": _rand(ks[0], (n_layers, d_model, d_ff)).astype(MATMUL_DTYPE),
        "b1": _rand(ks[1], (n_layers, 1, d_ff)),
        "w2": _rand(ks[2], (n_layers, d_ff, d_model)).astype(MATMUL_DTYPE),
        "b2": _rand(ks[3], (n_layers, 1, d_model)),
    }


def init_transformer(key, d_model, nhead, n_enc, n_dec, d_ff):
    k_ea, k_ef, k_ds, k_dc, k_df = jax.random.split(key, 5)
    enc = {}
    enc["attn_w"], enc["attn_b"] = _init_mha_stack(k_ea, n_enc, d_model, nhead)
    enc.update(_init_ffn_stack(k_ef, n_enc, d_model, d_ff))
    enc["ln_g"] = jnp.ones((n_enc, 2, 1, d_model), jnp.float32)
    enc["ln_b"] = jnp.zeros((n_enc, 2, 1, d_model), jnp.float32)

    dec = {}
    dec["self_w"], dec["self_b"] = _init_mha_stack(k_ds, n_dec, d_model, nhead)
    dec["cross_w"], dec["cross_b"] = _init_mha_stack(k_dc, n_dec, d_model, nhead)
    dec.update(_init_ffn_stack(k_df, n_dec, d_model, d_ff))
    dec["ln_g"] = jnp.ones((n_dec, 3, 1, d_model), jnp.float32)
    dec["ln_b"] = jnp.zeros((n_dec, 3, 1, d_model), jnp.float32)

    return {"encoder": enc, "decoder": dec, "nhead": nhead, "d_model": d_model}


# ---------------------------------------------------------------------------
# Forward pass
# ---------------------------------------------------------------------------

def bayes_transformer_forward(params, src, tgt, tgt_mask,
                              src_key_padding_mask, tgt_key_padding_mask):
    nhead = params["nhead"]

    # Tiny mask inputs; dense (B,1,Tq,Tk) biases are built inside the kernels.
    src_keep = (~src_key_padding_mask).astype(jnp.float32)[:, None, :]  # (B,1,S)
    tgt_keep = (~tgt_key_padding_mask).astype(jnp.float32)[:, None, :]  # (B,1,T)
    tgt_bias = jnp.where(tgt_mask, 0.0, NEG_INF).astype(jnp.float32)[None]  # (1,T,T)

    enc_out = encoder_forward(src, src_keep, params["encoder"], nhead)
    dec_out = decoder_forward(tgt, enc_out, tgt_bias, tgt_keep, src_keep,
                              params["decoder"], nhead)
    return dec_out


# ---------------------------------------------------------------------------
# Main
# ---------------------------------------------------------------------------

if __name__ == "__main__":
    B = 2
    S_SRC = 8
    T_TGT = 8
    D_MODEL = 32
    NHEAD = 4
    D_FF = 64
    N_ENC = 2
    N_DEC = 2

    key = jax.random.PRNGKey(0)
    k_par, k_src, k_tgt = jax.random.split(key, 3)

    params = init_transformer(k_par, D_MODEL, NHEAD, N_ENC, N_DEC, D_FF)

    src = jax.random.normal(k_src, (B, S_SRC, D_MODEL), jnp.float32)
    tgt = jax.random.normal(k_tgt, (B, T_TGT, D_MODEL), jnp.float32)

    # causal target mask (True == allowed)
    tgt_mask = jnp.tril(jnp.ones((T_TGT, T_TGT), dtype=bool))
    # key padding masks (True == pad); pad the last two src tokens of batch 1
    src_key_padding_mask = jnp.zeros((B, S_SRC), dtype=bool).at[1, -2:].set(True)
    tgt_key_padding_mask = jnp.zeros((B, T_TGT), dtype=bool)

    out = bayes_transformer_forward(
        params, src, tgt, tgt_mask, src_key_padding_mask, tgt_key_padding_mask)
    out = jax.block_until_ready(out)

    assert out.shape == (B, T_TGT, D_MODEL)
    assert bool(jnp.all(jnp.isfinite(out)))
    print("KERNEL_OK")
</pallas_src>

<mosaic_0001>
module attributes {stable_mosaic.version = 11 : i64} {
  func.func @_encoder_stack_kernel(%arg0: i32, %arg1: i32, %arg2: memref<1x8x32xf32, #tpu.memory_space<vmem>>, %arg3: memref<1x1x8xf32, #tpu.memory_space<vmem>>, %arg4: memref<1x4x32x32xbf16, #tpu.memory_space<vmem>>, %arg5: memref<1x4x1x32xf32, #tpu.memory_space<vmem>>, %arg6: memref<1x32x64xbf16, #tpu.memory_space<vmem>>, %arg7: memref<1x1x64xf32, #tpu.memory_space<vmem>>, %arg8: memref<1x64x32xbf16, #tpu.memory_space<vmem>>, %arg9: memref<1x1x32xf32, #tpu.memory_space<vmem>>, %arg10: memref<1x2x1x32xf32, #tpu.memory_space<vmem>>, %arg11: memref<1x2x1x32xf32, #tpu.memory_space<vmem>>, %arg12: memref<1x8x32xf32, #tpu.memory_space<vmem>>, %arg13: memref<8x32xf32, #tpu.memory_space<vmem>>) attributes {dimension_semantics = [#tpu.dimension_semantics<parallel>, #tpu.dimension_semantics<arbitrary>], iteration_bounds = array<i64: 2, 2>, scalar_prefetch = 0 : i64, scratch_operands = 1 : i64, tpu.core_type = #tpu.core_type<tc>, window_params = [{transform_indices = @transform_0, window_bounds = array<i64: 1, 8, 32>}, {transform_indices = @transform_1, window_bounds = array<i64: 1, 1, 8>}, {transform_indices = @transform_2, window_bounds = array<i64: 1, 4, 32, 32>}, {transform_indices = @transform_3, window_bounds = array<i64: 1, 4, 1, 32>}, {transform_indices = @transform_4, window_bounds = array<i64: 1, 32, 64>}, {transform_indices = @transform_5, window_bounds = array<i64: 1, 1, 64>}, {transform_indices = @transform_6, window_bounds = array<i64: 1, 64, 32>}, {transform_indices = @transform_7, window_bounds = array<i64: 1, 1, 32>}, {transform_indices = @transform_8, window_bounds = array<i64: 1, 2, 1, 32>}, {transform_indices = @transform_9, window_bounds = array<i64: 1, 2, 1, 32>}, {transform_indices = @transform_10, window_bounds = array<i64: 1, 8, 32>}]} {
    %c0_i32 = arith.constant 0 : i32
    %0 = arith.cmpi eq, %arg1, %c0_i32 : i32
    %1 = arith.extui %0 : i1 to i32
    %c0_i32_0 = arith.constant 0 : i32
    %2 = arith.cmpi ne, %1, %c0_i32_0 : i32
    scf.if %2 {
      %c0_87 = arith.constant 0 : index
      %c0_88 = arith.constant 0 : index
      %c0_89 = arith.constant 0 : index
      %143 = vector.load %arg2[%c0_87, %c0_88, %c0_89] : memref<1x8x32xf32, #tpu.memory_space<vmem>>, vector<1x8x32xf32>
      %144 = vector.shape_cast %143 : vector<1x8x32xf32> to vector<8x32xf32>
      %c0_90 = arith.constant 0 : index
      %c0_91 = arith.constant 0 : index
      %145 = vector.load %arg13[%c0_90, %c0_91] : memref<8x32xf32, #tpu.memory_space<vmem>>, vector<8x32xf32>
      tpu.vector_store %arg13[%c0_90, %c0_91], %144 {strides = array<i32>} : memref<8x32xf32, #tpu.memory_space<vmem>>, vector<8x32xf32>,
    } else {
    }
    %c0 = arith.constant 0 : index
    %c0_1 = arith.constant 0 : index
    %3 = vector.load %arg13[%c0, %c0_1] : memref<8x32xf32, #tpu.memory_space<vmem>>, vector<8x32xf32>
    %c0_2 = arith.constant 0 : index
    %c0_3 = arith.constant 0 : index
    %c0_4 = arith.constant 0 : index
    %4 = vector.load %arg3[%c0_2, %c0_3, %c0_4] : memref<1x1x8xf32, #tpu.memory_space<vmem>>, vector<1x1x8xf32>
    %5 = vector.shape_cast %4 : vector<1x1x8xf32> to vector<1x8xf32>
    %cst = arith.constant 1.000000e+00 : f32
    %6 = vector.broadcast %cst : f32 to vector<1x8xf32>
    %7 = arith.subf %6, %5 : vector<1x8xf32>
    %cst_5 = arith.constant -1.000000e+09 : f32
    %8 = vector.broadcast %cst_5 : f32 to vector<1x8xf32>
    %9 = arith.mulf %7, %8 : vector<1x8xf32>
    %10 = arith.truncf %3 : vector<8x32xf32> to vector<8x32xbf16>
    %11 = arith.truncf %3 : vector<8x32xf32> to vector<8x32xbf16>
    %c0_6 = arith.constant 0 : index
    %c0_7 = arith.constant 0 : index
    %c0_8 = arith.constant 0 : index
    %c0_9 = arith.constant 0 : index
    %12 = vector.load %arg4[%c0_6, %c0_7, %c0_8, %c0_9] : memref<1x4x32x32xbf16, #tpu.memory_space<vmem>>, vector<1x1x32x32xbf16>
    %13 = vector.shape_cast %12 : vector<1x1x32x32xbf16> to vector<32x32xbf16>
    %cst_10 = arith.constant dense<0.000000e+00> : vector<8x32xf32>
    %14 = tpu.matmul %10, %13, %cst_10 {dimension_numbers = #tpu.dot_dimension_numbers<[1], [0], [0], [1], [0, 0, 1, 1], [], []>} : vector<8x32xbf16>, vector<32x32xbf16>, vector<8x32xf32> -> vector<8x32xf32>
    %c0_11 = arith.constant 0 : index
    %c0_12 = arith.constant 0 : index
    %c0_13 = arith.constant 0 : index
    %c0_14 = arith.constant 0 : index
    %15 = vector.load %arg5[%c0_11, %c0_12, %c0_13, %c0_14] : memref<1x4x1x32xf32, #tpu.memory_space<vmem>>, vector<1x1x1x32xf32>
    %16 = vector.shape_cast %15 : vector<1x1x1x32xf32> to vector<1x32xf32>
    %17 = vector.broadcast %16 : vector<1x32xf32> to vector<8x32xf32>
    %18 = arith.addf %14, %17 : vector<8x32xf32>
    %c0_15 = arith.constant 0 : index
    %c1 = arith.constant 1 : index
    %c0_16 = arith.constant 0 : index
    %c0_17 = arith.constant 0 : index
    %19 = vector.load %arg4[%c0_15, %c1, %c0_16, %c0_17] : memref<1x4x32x32xbf16, #tpu.memory_space<vmem>>, vector<1x1x32x32xbf16>
    %20 = vector.shape_cast %19 : vector<1x1x32x32xbf16> to vector<32x32xbf16>
    %cst_18 = arith.constant dense<0.000000e+00> : vector<8x32xf32>
    %21 = tpu.matmul %11, %20, %cst_18 {dimension_numbers = #tpu.dot_dimension_numbers<[1], [0], [0], [1], [0, 0, 1, 1], [], []>} : vector<8x32xbf16>, vector<32x32xbf16>, vector<8x32xf32> -> vector<8x32xf32>
    %c0_19 = arith.constant 0 : index
    %c1_20 = arith.constant 1 : index
    %c0_21 = arith.constant 0 : index
    %c0_22 = arith.constant 0 : index
    %22 = vector.load %arg5[%c0_19, %c1_20, %c0_21, %c0_22] : memref<1x4x1x32xf32, #tpu.memory_space<vmem>>, vector<1x1x1x32xf32>
    %23 = vector.shape_cast %22 : vector<1x1x1x32xf32> to vector<1x32xf32>
    %24 = vector.broadcast %23 : vector<1x32xf32> to vector<8x32xf32>
    %25 = arith.addf %21, %24 : vector<8x32xf32>
    %c0_23 = arith.constant 0 : index
    %c2 = arith.constant 2 : index
    %c0_24 = arith.constant 0 : index
    %c0_25 = arith.constant 0 : index
    %26 = vector.load %arg4[%c0_23, %c2, %c0_24, %c0_25] : memref<1x4x32x32xbf16, #tpu.memory_space<vmem>>, vector<1x1x32x32xbf16>
    %27 = vector.shape_cast %26 : vector<1x1x32x32xbf16> to vector<32x32xbf16>
    %cst_26 = arith.constant dense<0.000000e+00> : vector<8x32xf32>
    %28 = tpu.matmul %11, %27, %cst_26 {dimension_numbers = #tpu.dot_dimension_numbers<[1], [0], [0], [1], [0, 0, 1, 1], [], []>} : vector<8x32xbf16>, vector<32x32xbf16>, vector<8x32xf32> -> vector<8x32xf32>
    %c0_27 = arith.constant 0 : index
    %c2_28 = arith.constant 2 : index
    %c0_29 = arith.constant 0 : index
    %c0_30 = arith.constant 0 : index
    %29 = vector.load %arg5[%c0_27, %c2_28, %c0_29, %c0_30] : memref<1x4x1x32xf32, #tpu.memory_space<vmem>>, vector<1x1x1x32xf32>
    %30 = vector.shape_cast %29 : vector<1x1x1x32xf32> to vector<1x32xf32>
    %31 = vector.broadcast %30 : vector<1x32xf32> to vector<8x32xf32>
    %32 = arith.addf %28, %31 : vector<8x32xf32>
    %33 = vector.shape_cast %18 : vector<8x32xf32> to vector<8x4x8xf32>
    %34 = tpu.transpose %33, [1, 0, 2] : vector<8x4x8xf32> -> vector<4x8x8xf32>
    %35 = arith.truncf %34 : vector<4x8x8xf32> to vector<4x8x8xbf16>
    %36 = vector.shape_cast %25 : vector<8x32xf32> to vector<8x4x8xf32>
    %37 = tpu.transpose %36, [1, 0, 2] : vector<8x4x8xf32> -> vector<4x8x8xf32>
    %38 = arith.truncf %37 : vector<4x8x8xf32> to vector<4x8x8xbf16>
    %39 = vector.shape_cast %32 : vector<8x32xf32> to vector<8x4x8xf32>
    %40 = tpu.transpose %39, [1, 0, 2] : vector<8x4x8xf32> -> vector<4x8x8xf32>
    %41 = arith.truncf %40 : vector<4x8x8xf32> to vector<4x8x8xbf16>
    "tpu.trace_start"() <{level = 10 : i32, message = "hqd,hkd->hqk"}> : () -> ()
    %cst_31 = arith.constant dense<0.000000e+00> : vector<4x8x8xf32>
    %42 = tpu.matmul %35, %38, %cst_31 {dimension_numbers = #tpu.dot_dimension_numbers<[2], [2], [1], [1], [0, 0, 0, 1, 1, 1], [0], [0]>} : vector<4x8x8xbf16>, vector<4x8x8xbf16>, vector<4x8x8xf32> -> vector<4x8x8xf32>
    "tpu.trace_stop"() : () -> ()
    %43 = vector.shape_cast %9 : vector<1x8xf32> to vector<1x1x8xf32>
    %44 = vector.broadcast %43 : vector<1x1x8xf32> to vector<4x8x8xf32>
    %45 = arith.addf %42, %44 : vector<4x8x8xf32>
    %cst_32 = arith.constant dense<0xFF800000> : vector<4x8xf32>
    %46 = vector.multi_reduction <maximumf>, %45, %cst_32 [2] : vector<4x8x8xf32> to vector<4x8xf32>
    %47 = vector.shape_cast %46 : vector<4x8xf32> to vector<4x8x1xf32>
    %48 = vector.broadcast %47 : vector<4x8x1xf32> to vector<4x8x8xf32>
    %49 = arith.subf %45, %48 : vector<4x8x8xf32>
    %50 = math.exp %49 : vector<4x8x8xf32>
    %cst_33 = arith.constant dense<0.000000e+00> : vector<4x8xf32>
    %51 = vector.multi_reduction <add>, %50, %cst_33 [2] : vector<4x8x8xf32> to vector<4x8xf32>
    %52 = vector.shape_cast %51 : vector<4x8xf32> to vector<4x8x1xf32>
    %53 = vector.broadcast %52 : vector<4x8x1xf32> to vector<4x8x8xf32>
    %54 = arith.divf %50, %53 : vector<4x8x8xf32>
    %55 = arith.truncf %54 : vector<4x8x8xf32> to vector<4x8x8xbf16>
    "tpu.trace_start"() <{level = 10 : i32, message = "hqk,hkd->hqd"}> : () -> ()
    %cst_34 = arith.constant dense<0.000000e+00> : vector<4x8x8xf32>
    %56 = tpu.matmul %55, %41, %cst_34 {dimension_numbers = #tpu.dot_dimension_numbers<[2], [1], [1], [2], [0, 0, 0, 1, 1, 2], [0], [0]>} : vector<4x8x8xbf16>, vector<4x8x8xbf16>, vector<4x8x8xf32> -> vector<4x8x8xf32>
    "tpu.trace_stop"() : () -> ()
    %57 = tpu.transpose %56, [1, 0, 2] : vector<4x8x8xf32> -> vector<8x4x8xf32>
    %58 = vector.shape_cast %57 : vector<8x4x8xf32> to vector<8x32xf32>
    %59 = arith.truncf %58 : vector<8x32xf32> to vector<8x32xbf16>
    %c0_35 = arith.constant 0 : index
    %c3 = arith.constant 3 : index
    %c0_36 = arith.constant 0 : index
    %c0_37 = arith.constant 0 : index
    %60 = vector.load %arg4[%c0_35, %c3, %c0_36, %c0_37] : memref<1x4x32x32xbf16, #tpu.memory_space<vmem>>, vector<1x1x32x32xbf16>
    %61 = vector.shape_cast %60 : vector<1x1x32x32xbf16> to vector<32x32xbf16>
    %cst_38 = arith.constant dense<0.000000e+00> : vector<8x32xf32>
    %62 = tpu.matmul %59, %61, %cst_38 {dimension_numbers = #tpu.dot_dimension_numbers<[1], [0], [0], [1], [0, 0, 1, 1], [], []>} : vector<8x32xbf16>, vector<32x32xbf16>, vector<8x32xf32> -> vector<8x32xf32>
    %c0_39 = arith.constant 0 : index
    %c3_40 = arith.constant 3 : index
    %c0_41 = arith.constant 0 : index
    %c0_42 = arith.constant 0 : index
    %63 = vector.load %arg5[%c0_39, %c3_40, %c0_41, %c0_42] : memref<1x4x1x32xf32, #tpu.memory_space<vmem>>, vector<1x1x1x32xf32>
    %64 = vector.shape_cast %63 : vector<1x1x1x32xf32> to vector<1x32xf32>
    %65 = vector.broadcast %64 : vector<1x32xf32> to vector<8x32xf32>
    %66 = arith.addf %62, %65 : vector<8x32xf32>
    %67 = arith.addf %3, %66 : vector<8x32xf32>
    %c0_43 = arith.constant 0 : index
    %c0_44 = arith.constant 0 : index
    %c0_45 = arith.constant 0 : index
    %c0_46 = arith.constant 0 : index
    %68 = vector.load %arg10[%c0_43, %c0_44, %c0_45, %c0_46] : memref<1x2x1x32xf32, #tpu.memory_space<vmem>>, vector<1x1x1x32xf32>
    %69 = vector.shape_cast %68 : vector<1x1x1x32xf32> to vector<1x32xf32>
    %c0_47 = arith.constant 0 : index
    %c0_48 = arith.constant 0 : index
    %c0_49 = arith.constant 0 : index
    %c0_50 = arith.constant 0 : index
    %70 = vector.load %arg11[%c0_47, %c0_48, %c0_49, %c0_50] : memref<1x2x1x32xf32, #tpu.memory_space<vmem>>, vector<1x1x1x32xf32>
    %71 = vector.shape_cast %70 : vector<1x1x1x32xf32> to vector<1x32xf32>
    %cst_51 = arith.constant dense<0.000000e+00> : vector<8xf32>
    %72 = vector.multi_reduction <add>, %67, %cst_51 [1] : vector<8x32xf32> to vector<8xf32>
    %73 = vector.shape_cast %72 : vector<8xf32> to vector<8x1xf32>
    %cst_52 = arith.constant 3.200000e+01 : f32
    %74 = vector.broadcast %cst_52 : f32 to vector<8x1xf32>
    %75 = arith.divf %73, %74 : vector<8x1xf32>
    %76 = vector.broadcast %75 : vector<8x1xf32> to vector<8x32xf32>
    %77 = arith.subf %67, %76 : vector<8x32xf32>
    %78 = arith.mulf %77, %77 : vector<8x32xf32>
    %cst_53 = arith.constant dense<0.000000e+00> : vector<8xf32>
    %79 = vector.multi_reduction <add>, %78, %cst_53 [1] : vector<8x32xf32> to vector<8xf32>
    %80 = vector.shape_cast %79 : vector<8xf32> to vector<8x1xf32>
    %cst_54 = arith.constant 3.200000e+01 : f32
    %81 = vector.broadcast %cst_54 : f32 to vector<8x1xf32>
    %82 = arith.divf %80, %81 : vector<8x1xf32>
    %83 = vector.broadcast %75 : vector<8x1xf32> to vector<8x32xf32>
    %84 = arith.subf %67, %83 : vector<8x32xf32>
    %cst_55 = arith.constant 9.99999974E-6 : f32
    %85 = vector.broadcast %cst_55 : f32 to vector<8x1xf32>
    %86 = arith.addf %82, %85 : vector<8x1xf32>
    %87 = math.rsqrt %86 : vector<8x1xf32>
    %88 = vector.broadcast %87 : vector<8x1xf32> to vector<8x32xf32>
    %89 = arith.mulf %84, %88 : vector<8x32xf32>
    %90 = vector.broadcast %69 : vector<1x32xf32> to vector<8x32xf32>
    %91 = arith.mulf %89, %90 : vector<8x32xf32>
    %92 = vector.broadcast %71 : vector<1x32xf32> to vector<8x32xf32>
    %93 = arith.addf %91, %92 : vector<8x32xf32>
    %94 = arith.truncf %93 : vector<8x32xf32> to vector<8x32xbf16>
    %c0_56 = arith.constant 0 : index
    %c0_57 = arith.constant 0 : index
    %c0_58 = arith.constant 0 : index
    %95 = vector.load %arg6[%c0_56, %c0_57, %c0_58] : memref<1x32x64xbf16, #tpu.memory_space<vmem>>, vector<1x32x64xbf16>
    %96 = vector.shape_cast %95 : vector<1x32x64xbf16> to vector<32x64xbf16>
    %cst_59 = arith.constant dense<0.000000e+00> : vector<8x64xf32>
    %97 = tpu.matmul %94, %96, %cst_59 {dimension_numbers = #tpu.dot_dimension_numbers<[1], [0], [0], [1], [0, 0, 1, 1], [], []>} : vector<8x32xbf16>, vector<32x64xbf16>, vector<8x64xf32> -> vector<8x64xf32>
    %c0_60 = arith.constant 0 : index
    %c0_61 = arith.constant 0 : index
    %c0_62 = arith.constant 0 : index
    %98 = vector.load %arg7[%c0_60, %c0_61, %c0_62] : memref<1x1x64xf32, #tpu.memory_space<vmem>>, vector<1x1x64xf32>
    %99 = vector.shape_cast %98 : vector<1x1x64xf32> to vector<1x64xf32>
    %100 = vector.broadcast %99 : vector<1x64xf32> to vector<8x64xf32>
    %101 = arith.addf %97, %100 : vector<8x64xf32>
    %cst_63 = arith.constant 0.000000e+00 : f32
    %102 = vector.broadcast %cst_63 : f32 to vector<8x64xf32>
    %103 = arith.maximumf %101, %102 : vector<8x64xf32>
    %104 = arith.truncf %103 : vector<8x64xf32> to vector<8x64xbf16>
    %c0_64 = arith.constant 0 : index
    %c0_65 = arith.constant 0 : index
    %c0_66 = arith.constant 0 : index
    %105 = vector.load %arg8[%c0_64, %c0_65, %c0_66] : memref<1x64x32xbf16, #tpu.memory_space<vmem>>, vector<1x64x32xbf16>
    %106 = vector.shape_cast %105 : vector<1x64x32xbf16> to vector<64x32xbf16>
    %cst_67 = arith.constant dense<0.000000e+00> : vector<8x32xf32>
    %107 = tpu.matmul %104, %106, %cst_67 {dimension_numbers = #tpu.dot_dimension_numbers<[1], [0], [0], [1], [0, 0, 1, 1], [], []>} : vector<8x64xbf16>, vector<64x32xbf16>, vector<8x32xf32> -> vector<8x32xf32>
    %c0_68 = arith.constant 0 : index
    %c0_69 = arith.constant 0 : index
    %c0_70 = arith.constant 0 : index
    %108 = vector.load %arg9[%c0_68, %c0_69, %c0_70] : memref<1x1x32xf32, #tpu.memory_space<vmem>>, vector<1x1x32xf32>
    %109 = vector.shape_cast %108 : vector<1x1x32xf32> to vector<1x32xf32>
    %110 = vector.broadcast %109 : vector<1x32xf32> to vector<8x32xf32>
    %111 = arith.addf %107, %110 : vector<8x32xf32>
    %112 = arith.addf %93, %111 : vector<8x32xf32>
    %c0_71 = arith.constant 0 : index
    %c1_72 = arith.constant 1 : index
    %c0_73 = arith.constant 0 : index
    %c0_74 = arith.constant 0 : index
    %113 = vector.load %arg10[%c0_71, %c1_72, %c0_73, %c0_74] : memref<1x2x1x32xf32, #tpu.memory_space<vmem>>, vector<1x1x1x32xf32>
    %114 = vector.shape_cast %113 : vector<1x1x1x32xf32> to vector<1x32xf32>
    %c0_75 = arith.constant 0 : index
    %c1_76 = arith.constant 1 : index
    %c0_77 = arith.constant 0 : index
    %c0_78 = arith.constant 0 : index
    %115 = vector.load %arg11[%c0_75, %c1_76, %c0_77, %c0_78] : memref<1x2x1x32xf32, #tpu.memory_space<vmem>>, vector<1x1x1x32xf32>
    %116 = vector.shape_cast %115 : vector<1x1x1x32xf32> to vector<1x32xf32>
    %cst_79 = arith.constant dense<0.000000e+00> : vector<8xf32>
    %117 = vector.multi_reduction <add>, %112, %cst_79 [1] : vector<8x32xf32> to vector<8xf32>
    %118 = vector.shape_cast %117 : vector<8xf32> to vector<8x1xf32>
    %cst_80 = arith.constant 3.200000e+01 : f32
    %119 = vector.broadcast %cst_80 : f32 to vector<8x1xf32>
    %120 = arith.divf %118, %119 : vector<8x1xf32>
    %121 = vector.broadcast %120 : vector<8x1xf32> to vector<8x32xf32>
    %122 = arith.subf %112, %121 : vector<8x32xf32>
    %123 = arith.mulf %122, %122 : vector<8x32xf32>
    %cst_81 = arith.constant dense<0.000000e+00> : vector<8xf32>
    %124 = vector.multi_reduction <add>, %123, %cst_81 [1] : vector<8x32xf32> to vector<8xf32>
    %125 = vector.shape_cast %124 : vector<8xf32> to vector<8x1xf32>
    %cst_82 = arith.constant 3.200000e+01 : f32
    %126 = vector.broadcast %cst_82 : f32 to vector<8x1xf32>
    %127 = arith.divf %125, %126 : vector<8x1xf32>
    %128 = vector.broadcast %120 : vector<8x1xf32> to vector<8x32xf32>
    %129 = arith.subf %112, %128 : vector<8x32xf32>
    %cst_83 = arith.constant 9.99999974E-6 : f32
    %130 = vector.broadcast %cst_83 : f32 to vector<8x1xf32>
    %131 = arith.addf %127, %130 : vector<8x1xf32>
    %132 = math.rsqrt %131 : vector<8x1xf32>
    %133 = vector.broadcast %132 : vector<8x1xf32> to vector<8x32xf32>
    %134 = arith.mulf %129, %133 : vector<8x32xf32>
    %135 = vector.broadcast %114 : vector<1x32xf32> to vector<8x32xf32>
    %136 = arith.mulf %134, %135 : vector<8x32xf32>
    %137 = vector.broadcast %116 : vector<1x32xf32> to vector<8x32xf32>
    %138 = arith.addf %136, %137 : vector<8x32xf32>
    %c0_84 = arith.constant 0 : index
    %c0_85 = arith.constant 0 : index
    %139 = vector.load %arg13[%c0_84, %c0_85] : memref<8x32xf32, #tpu.memory_space<vmem>>, vector<8x32xf32>
    tpu.vector_store %arg13[%c0_84, %c0_85], %138 {strides = array<i32>} : memref<8x32xf32, #tpu.memory_space<vmem>>, vector<8x32xf32>,
    %c1_i32 = arith.constant 1 : i32
    %140 = arith.cmpi eq, %arg1, %c1_i32 : i32
    %141 = arith.extui %140 : i1 to i32
    %c0_i32_86 = arith.constant 0 : i32
    %142 = arith.cmpi ne, %141, %c0_i32_86 : i32
    scf.if %142 {
      %c0_87 = arith.constant 0 : index
      %c0_88 = arith.constant 0 : index
      %c0_89 = arith.constant 0 : index
      %143 = vector.load %arg12[%c0_87, %c0_88, %c0_89] : memref<1x8x32xf32, #tpu.memory_space<vmem>>, vector<1x8x32xf32>
      %144 = vector.shape_cast %143 : vector<1x8x32xf32> to vector<8x32xf32>
      %145 = vector.shape_cast %138 : vector<8x32xf32> to vector<1x8x32xf32>
      tpu.vector_store %arg12[%c0_87, %c0_88, %c0_89], %145 {strides = array<i32>} : memref<1x8x32xf32, #tpu.memory_space<vmem>>, vector<1x8x32xf32>,
    } else {
    }
    return
  }
  func.func @transform_0(%arg0: i32, %arg1: i32) -> (i32, i32, i32) {
    %c0_i32 = arith.constant 0 : i32
    %c0_i32_0 = arith.constant 0 : i32
    %c0_i32_1 = arith.constant 0 : i32
    return %arg0, %c0_i32, %c0_i32_0 : i32, i32, i32
  }
  func.func @transform_1(%arg0: i32, %arg1: i32) -> (i32, i32, i32) {
    %c0_i32 = arith.constant 0 : i32
    %c0_i32_0 = arith.constant 0 : i32
    %c0_i32_1 = arith.constant 0 : i32
    return %arg0, %c0_i32, %c0_i32_0 : i32, i32, i32
  }
  func.func @transform_2(%arg0: i32, %arg1: i32) -> (i32, i32, i32, i32) {
    %c0_i32 = arith.constant 0 : i32
    %c0_i32_0 = arith.constant 0 : i32
    %c0_i32_1 = arith.constant 0 : i32
    %c0_i32_2 = arith.constant 0 : i32
    return %arg1, %c0_i32, %c0_i32_0, %c0_i32_1 : i32, i32, i32, i32
  }
  func.func @transform_3(%arg0: i32, %arg1: i32) -> (i32, i32, i32, i32) {
    %c0_i32 = arith.constant 0 : i32
    %c0_i32_0 = arith.constant 0 : i32
    %c0_i32_1 = arith.constant 0 : i32
    %c0_i32_2 = arith.constant 0 : i32
    return %arg1, %c0_i32, %c0_i32_0, %c0_i32_1 : i32, i32, i32, i32
  }
  func.func @transform_4(%arg0: i32, %arg1: i32) -> (i32, i32, i32) {
    %c0_i32 = arith.constant 0 : i32
    %c0_i32_0 = arith.constant 0 : i32
    %c0_i32_1 = arith.constant 0 : i32
    return %arg1, %c0_i32, %c0_i32_0 : i32, i32, i32
  }
  func.func @transform_5(%arg0: i32, %arg1: i32) -> (i32, i32, i32) {
    %c0_i32 = arith.constant 0 : i32
    %c0_i32_0 = arith.constant 0 : i32
    %c0_i32_1 = arith.constant 0 : i32
    return %arg1, %c0_i32, %c0_i32_0 : i32, i32, i32
  }
  func.func @transform_6(%arg0: i32, %arg1: i32) -> (i32, i32, i32) {
    %c0_i32 = arith.constant 0 : i32
    %c0_i32_0 = arith.constant 0 : i32
    %c0_i32_1 = arith.constant 0 : i32
    return %arg1, %c0_i32, %c0_i32_0 : i32, i32, i32
  }
  func.func @transform_7(%arg0: i32, %arg1: i32) -> (i32, i32, i32) {
    %c0_i32 = arith.constant 0 : i32
    %c0_i32_0 = arith.constant 0 : i32
    %c0_i32_1 = arith.constant 0 : i32
    return %arg1, %c0_i32, %c0_i32_0 : i32, i32, i32
  }
  func.func @transform_8(%arg0: i32, %arg1: i32) -> (i32, i32, i32, i32) {
    %c0_i32 = arith.constant 0 : i32
    %c0_i32_0 = arith.constant 0 : i32
    %c0_i32_1 = arith.constant 0 : i32
    %c0_i32_2 = arith.constant 0 : i32
    return %arg1, %c0_i32, %c0_i32_0, %c0_i32_1 : i32, i32, i32, i32
  }
  func.func @transform_9(%arg0: i32, %arg1: i32) -> (i32, i32, i32, i32) {
    %c0_i32 = arith.constant 0 : i32
    %c0_i32_0 = arith.constant 0 : i32
    %c0_i32_1 = arith.constant 0 : i32
    %c0_i32_2 = arith.constant 0 : i32
    return %arg1, %c0_i32, %c0_i32_0, %c0_i32_1 : i32, i32, i32, i32
  }
  func.func @transform_10(%arg0: i32, %arg1: i32) -> (i32, i32, i32) {
    %c0_i32 = arith.constant 0 : i32
    %c0_i32_0 = arith.constant 0 : i32
    %c0_i32_1 = arith.constant 0 : i32
    return %arg0, %c0_i32, %c0_i32_0 : i32, i32, i32
  }
}

</mosaic_0001>

<bundles_post_ra>
// kernel: tpu_custom_call.1
= control target key start
LH: loop header
LB: loop body
LE: loop exit
PB: predicated region body
PF: predicated region fallthrough
CT: control target
= control target key end

     0   :  { %s3362_s0 = inlined_call_operand.vmem [shape: f32[2,8,32], index: 0, kind: input, shape index: {}]   ;;  %s3363_s1 = inlined_call_operand.vmem [shape: f32[2,1,8], index: 1, kind: input, shape index: {}]   ;;  %s3364_s2 = inlined_call_operand.hbm [shape: bf16[2,4,32,32], index: 2, kind: input, shape index: {}]   ;;  %s3365_s3 = inlined_call_operand.vmem [shape: f32[2,4,1,32], index: 3, kind: input, shape index: {}]   ;;  %s3366_s4 = inlined_call_operand.vmem [shape: bf16[2,32,64], index: 4, kind: input, shape index: {}]   ;;  %s3367_s5 = inlined_call_operand.vmem [shape: f32[2,1,64], index: 5, kind: input, shape index: {}]   ;;  %s3368_s6 = inlined_call_operand.vmem [shape: bf16[2,64,32], index: 6, kind: input, shape index: {}]   ;;  %s3369_s7 = inlined_call_operand.vmem [shape: f32[2,1,32], index: 7, kind: input, shape index: {}]   ;;  %s3370_s8 = inlined_call_operand.vmem [shape: f32[2,2,1,32], index: 8, kind: input, shape index: {}]   ;;  %s3371_s9 = inlined_call_operand.vmem [shape: f32[2,2,1,32], index: 9, kind: input, shape index: {}]   ;;  %s3372_s10 = inlined_call_operand.hbm [shape: f32[2,8,32], index: 10, kind: output, shape index: {}]  }
   0x1   :  { %3390 = sst [smem:[#allocation23_spill]] %s3362_s0 }
   0x2   :  { %3391 = sst [smem:[#allocation24_spill]] %s3364_s2 }
   0x3   :  { %3392 = sst [smem:[#allocation25_spill]] %s3365_s3 }
   0x4   :  { %3393 = sst [smem:[#allocation26_spill]] %s3371_s9 }
   0x5   :  { %3394 = sst [smem:[#allocation27_spill]] %s3372_s10 }
   0x6   :  { %15 = vsyncpa [#allocation4], 0 }
   0x7   :  { %17 = vsyncpa [#allocation4 + $0x1], 0 }
   0x8   :  { %18 = vsyncpa [#allocation5], 0 }
   0x9   :  { %20 = vsyncpa [#allocation5 + $0x1], 0  ;;  %s2858_s13 = smov 0   ;;  %s2860_s14 = smov 0  }
   0xa   :  { %s2862_s15 = smov 0   ;;  %s2864_s16 = smov 0  }
   0xb   :  { %s2866_s17 = smov 0   ;;  %s2868_s18 = smov 0  }
   0xc   :  { %s2870_s19 = smov 0   ;;  %s2872_s20 = smov 0  }
   0xd   :  { %s2874_s21 = smov 0   ;;  %s2876_s22 = smov 0  }
   0xe   :  { %s2878_s23 = smov 0  }
   0xf LB: > { %3395 = sst [smem:[#allocation9_spill]] %s2747_s13  ;;  %s2261_s24 = sadd.s32 4294967295, %s2787_s23   ;;  %s2787_s23 = sphi %s2878_s23, %s26_s23   ;;  %s2783_s22 = sphi %s2876_s22, %s3439_s22   ;;  %s2779_s21 = sphi %s2874_s21, %s3438_s21   ;;  %s2775_s20 = sphi %s2872_s20, %s3437_s20   ;;  %s2771_s19 = sphi %s2870_s19, %s3436_s19   ;;  %s2767_s18 = sphi %s2868_s18, %s3435_s18   ;;  %s2763_s17 = sphi %s2866_s17, %s3434_s17   ;;  %s2759_s16 = sphi %s2864_s16, %s3433_s16   ;;  %s2755_s15 = sphi %s2862_s15, %s3432_s15   ;;  %s2751_s14 = sphi %s2860_s14, %s3431_s14   ;;  %s2747_s13 = sphi %s2858_s13, %s3430_s13  }
  0x10   : > { %3396 = sst [smem:[#allocation10_spill]] %s2751_s14  ;;  %s2262_s25 = sadd.s32 4294967294, %s2787_s23  }
  0x11   : > { %3397 = sst [smem:[#allocation11_spill]] %s2755_s15  ;;  %s35_s26 = sadd.s32 1, %s2779_s21 }
  0x12   : > { %3398 = sst [smem:[#allocation12_spill]] %s2763_s17  ;;  %s38_s27 = sadd.s32 1, %s2783_s22 }
  0x13   : > { %3399 = sst [smem:[#allocation13_spill]] %s2767_s18  ;;  %p36_p0 = scmp.ge.s32.totalorder %s35_s26, 2 }
  0x14   : > { %3400 = sst [smem:[#allocation14_spill]] %s2779_s21  ;;  %s97_s28 = sadd.s32 1, %s2767_s18 }
  0x15   : > { %3401 = sst [smem:[#allocation15_spill]] %s2783_s22  ;;  %p104_p1 = scmp.ne.s32.totalorder %s2767_s18, %s2763_s17 }
  0x16   : > { %3402 = sst [smem:[#allocation16_spill]] %s2787_s23  ;;  %p105_p2 = scmp.eq.s32.totalorder %s2787_s23, 0 }
  0x17   : > { %s3441_s26 = smov (%p36_p0, %s35_s26), 0  ;;  %s3443_s27 = smov (!%p36_p0, %s38_s27), %s2783_s22 }
  0x18   : > { %3403 = sst [smem:[#allocation17_spill]] %s3441_s26  ;;  %s94_s29 = ssub.s32 %s2779_s21, %s3441_s26 }
  0x19   : > { %p2924_p3 = por %p105_p2, %p104_p1  ;;  %p40_p4 = scmp.ge.s32.totalorder %s3443_s27, 2 }
  0x1a   : > { %p95_p5 = scmp.eq.s32.totalorder %s94_s29, 0  ;;  %p110_p6 = scmp.ne.s32.totalorder %s2763_s17, %s2759_s16 }
  0x1b   : > { %p111_p7 = scmp.eq.s32.totalorder %s2261_s24, 0  ;;  %s3445_s27 = smov (%p40_p4, %s3443_s27), 0 }
  0x1c   : > { %3405 = sst [smem:[#allocation18_spill]] %s3445_s27  ;;  %s302_s26 = ssub.s32 %s2783_s22, %s3445_s27 }
  0x1d   : > { %s2932_s11 = scalar_select %p95_p5, %s2767_s18, %s97_s28  }
  0x1e   : > { %p2934_p8 = por %p111_p7, %p110_p6  ;;  %p303_p9 = scmp.eq.s32.totalorder %s302_s26, 0 }
  0x1f   : > { %3406 = sst [smem:[#allocation19_spill]] %s2932_s11  ;;  %s305_s10 = sadd.s32 1, %s2755_s15 }
  0x20   : > { %p315_p10 = scmp.ne.s32.totalorder %s2755_s15, %s2751_s14  ;;  %p316_p11 = scmp.eq.s32.totalorder %s2261_s24, 3 }
  0x21   : > { %s2944_s29 = scalar_select %p303_p9, %s2755_s15, %s305_s10  }
  0x22   : > { %p2946_p12 = por %p316_p11, %p315_p10  ;;  %p321_p13 = scmp.ne.s32.totalorder %s2751_s14, %s2747_s13 }
  0x23   : > { %3408 = sst [smem:[#allocation20_spill]] %s2944_s29  ;;  %p322_p0 = scmp.eq.s32.totalorder %s2262_s25, 3 }
  0x24   : > { %s3409_s16 = scalar_select %p2946_p12, 1, 0 }
  0x25   : > { %p2499_p1 = scmp.lt.s32.totalorder %s2787_s23, 4  ;;  %s355_s28 = sand.u32 1, %s2767_s18  }
  0x26   : > { %3410 = sst [smem:[#allocation21_spill]] %s3409_s16  ;;  %p2954_p2 = por %p322_p0, %p321_p13 }
  0x27   : > { %s2265_s27 = sshll.u32 %s355_s28, 6  ;;  %s2348_s26 = sshll.u32 %s2779_s21, 10 }
  0x28   : > { %s3411_s11 = scalar_select %p2954_p2, 1, 0 }
  0x29   : > { %s3413_s2 = sld [smem:[#allocation24_spill]]  ;;  %s359_s10 = scalar_lea.vmem [#allocation3], %s2265_s27 }
  0x2a   : > { %3412 = sst [smem:[#allocation22_spill]] %s3411_s11  ;;  %s366_s29 = sshll.u32 %s359_s10, 4  ;;  %s2970_s29 = int_to_ptr.vmem [resolvable:$true] %s366_s29 }
  0x2b   : > { %p2966_p4 = pnand %p2499_p1, %p2924_p3  ;;  %s2972_s21 = scalar_lea.sflag [#allocation4], %s355_s28 }
  0x2d   : > { %p2637_p6 = pneg %p2966_p4 }
  0x2f   : > { %s2962_s24 = scalar_lea.hbm %s3413_s2, %s2348_s26  ;;  %s2640_s30 = scalar_lea.hbm %s3413_s2, 2048 }
  0x30   : > { %s2635_s9 = scalar_lea.hbm %s2962_s24, 1024  ;;  %p2641_p3 = scmp.lt.u32.totalorder %s2962_s24, %s3413_s2 }
  0x31   : > { %p2636_p5 = scmp.ne.s32.totalorder %s2962_s24, %s2635_s9  ;;  %p2642_p10 = scmp.lt.u32.totalorder %s2640_s30, %s2635_s9 }
  0x32   : > { %p2644_p13 = scmp.lt.u32.totalorder %s2635_s9, %s2962_s24 }
  0x33   : > { %p2638_p7 = pnand %p2637_p6, %p2636_p5  ;;  %p2643_p11 = por %p2642_p10, %p2641_p3 }
  0x35   : > { %p2639_p9 = pneg %p2638_p7  ;;  %p2645_p0 = por %p2644_p13, %p2643_p11 }
  0x37   : > { %p2646_p1 = pnand %p2645_p0, %p2639_p9 }
  0x39   : > { %2649 = shalt.err (!%p2646_p1)
}
  0x3a   : > { %s2650_s28 = scalar_lea.vmem %s2970_s29, 1024  ;;  %s2789_s22 = smov [#allocation3]  }
  0x3b   : > { %p2651_p5 = scmp.ne.s32.totalorder %s2970_s29, %s2650_s28  ;;  %s2655_s27 = sshll.u32 %s2789_s22, 4  ;;  %s2656_s27 = int_to_ptr.vmem [resolvable:$false] %s2655_s27 }
  0x3c   : > { %s2657_s26 = scalar_lea.vmem %s2656_s27, 2048  ;;  %p2658_p12 = scmp.lt.s32.totalorder %s2970_s29, %s2656_s27 }
  0x3d   : > { %p2653_p7 = pnand %p2651_p5, %p2637_p6  ;;  %p2659_p3 = scmp.lt.s32.totalorder %s2657_s26, %s2650_s28 }
  0x3f   : > { %p2654_p2 = pneg %p2653_p7  ;;  %p2660_p10 = por %p2659_p3, %p2658_p12 }
  0x41   : > { %p2661_p11 = pnand %p2660_p10, %p2654_p2 }
  0x43   : > { %2664 = shalt.err (!%p2661_p11)
}
  0x44   : > { %s2790_s9 = smov 64   ;;  %s2791_s30 = smov 4  }
  0x45   : > { %2494 = dma.hbm_to_vmem [thread:$0]  (!%p2966_p4), %s2962_s24, 1024, %s2970_s29, %s2972_s21, %s2790_s9, %s2790_s9, %s2791_s30  }
  0x46   : > { %p2268_p6 = scmp.ge.s32.totalorder %s2787_s23, 1  ;;  %p423_p9 = scmp.lt.s32.totalorder %s2787_s23, 5 }
  0x48   : > { %p424_p13 = pnand %p2268_p6, %p423_p9 }
  0x49   : > { %s429_s10 = sand.u32 (!%p424_p13), 1, %s2763_s17  }
  0x4a   : > { %427 = sbr.rel (%p424_p13) target bundleno = 2714 (0xa9a), region = 60  ;;  %s2269_s28 = sshll.u32 (!%p424_p13), %s429_s10, 6 }
  0x4b   : > { %s430_s22 = scalar_lea.sflag (!%p424_p13), [#allocation4], %s429_s10  ;;  %s3003_s27 = scalar_lea.vmem (!%p424_p13), [#allocation3], %s2269_s28 }
  0x51   : > { %2738 = dma.done.wait (%p2934_p8), %s430_s22, 1024  }
  0x52   : > { %2740 = vsyncadd (%p2934_p8), %s430_s22, 4294966272  ;;  %s3379_s21 = sand.u32 1, %s2751_s14   ;;  %p505_p12 = scmp.lt.s32.totalorder %s2775_s20, 1 }
  0x53   : > { %s3013_s29 = sshll.u32 %s3379_s21, 3  ;;  %p512_p2 = scmp.lt.s32.totalorder %s2771_s19, 1 }
  0x54   : > { %s3017_s24 = scalar_select %p505_p12, %s2775_s20, 1 }
  0x55   : > { %s3020_s25 = scalar_select %p512_p2, %s2771_s19, 1 }
  0x56   : > { %s2271_s12 = sshll.u32 %s3017_s24, 3  ;;  %s3415_s0 = sld [smem:[#allocation23_spill]] }
  0x57   : > { %s2272_s21 = sshll.u32 %s3020_s25, 2  ;;  %s3416_s3 = sld [smem:[#allocation25_spill]] }
  0x58   : > { %s2349_s15 = sshll.u32 %s3020_s25, 4  ;;  %s2350_s9 = sshll.u32 %s3020_s25, 5 }
  0x59   : > { %s3040_s23 = scalar_lea.vmem %s3366_s4, %s2349_s15  ;;  %s3054_s2 = scalar_lea.vmem %s3368_s6, %s2350_s9 }
  0x5a   : > { %s2277_s18 = sshll.u32 %s3020_s25, 1  ;;  %s3417_s14 = sld [smem:[#allocation26_spill]] }
  0x5b   : > { %s3060_s13 = scalar_lea.vmem %s3370_s8, %s2277_s18  ;;  %s504_s26 = scalar_lea.vmem [#allocation6], %s3013_s29 }
  0x5c   : > { %s508_s22 = scalar_lea.vmem %s3415_s0, %s2271_s12  ;;  %s531_s12 = scalar_lea.vmem %s3369_s7, %s3020_s25 }
  0x5d   : > { %s3034_s17 = scalar_lea.vmem %s3416_s3, %s2272_s21  ;;  %p2279_p8 = scmp.ne.s32.totalorder %s2771_s19, 0 }
  0x5e   : > { %v545_v0 = vld [vmem:[%s508_s22] sm:$0xff] (!%p2279_p8)  ;;  %vm546_vm0 = vcmask (!%p2279_p8), 261120  }
  0x5f   : > { %544 = sbr.rel (%p2279_p8) target bundleno = 102 (0x66), region = 68  ;;  %547 = vst.msk [vmem:[#allocation2] sm:$0xff] (!%p2279_p8), %vm546_vm0, %v545_v0 }
  0x60   : > { %s3065_s16 = scalar_lea.vmem %s3417_s14, %s2277_s18 }
  0x66 PF: > { %v2601_v1 = vld [vmem:[%s3003_s27 + $0x10] sm:$0xff]   ;;  %v2792_v2 = vmov 0.0   ;;  %v2602_v3 = vld [vmem:[%s3003_s27] sm:$0xff]   ;;  %v2603_v4 = vld [vmem:[%s3003_s27 + $0x18] sm:$0xff]   ;;  %vm2793_vm1 = vmmov 0   ;;  %vm576_vm2 = vcmask 261120   ;;  %v765_v24 = vlaneseq  ;;  %s3418_s10 = scalar_lea.vmem %s3363_s1, %s3017_s24  ;;  %s3419_s18 = scalar_lea.vmem %s3367_s5, %s3020_s25 }
  0x67   : > { %2395 = vmatprep.subr.bf16.mxu1 %v2792_v2  ;;  %2387 = vmatprep.subr.bf16.mxu0 %v2792_v2  ;;  %v3077_v5 = vld [vmem:[#allocation2] sm:$0xff]  ;;  %v2604_v6 = vld [vmem:[%s3003_s27 + $0x8] sm:$0xff]   ;;  %v2605_v14 = vld [vmem:[%s3003_s27 + $0x20] sm:$0xff]   ;;  %s2794_s0 = smov 104   ;;  %s2795_s3 = smov 120   ;;  %vm1206_vm3 = vcmask 64512  }
  0x68   : > { %2396 = vmatpush3.bf16.msra.mxu1 %v2601_v1  ;;  %2399 = vmatprep.mubr.msk.bf16.mxu1 %vm2793_vm1, %v2792_v2  ;;  %v552_v7 = vpack.c.bf16 %v3077_v5, %v3077_v5  ;;  %v2289_v8 = vld [vmem:[%s3034_s17 + $0x1] ss:$0 sm:$0xff]  ;;  %v2280_v10 = vld [vmem:[%s3034_s17] ss:$0 sm:$0xff]  ;;  %v2606_v21 = vld [vmem:[%s3003_s27 + $0x28] sm:$0xff]   ;;  %s2796_s30 = smov 112  }
  0x69   : > { %2397 = vmatprep.subr.bf16.mxu1 %v2792_v2  ;;  %2388 = vmatpush3.bf16.msra.mxu0 %v2602_v3  ;;  %v2797_v22 = vmov 1983009808   ;;  %v2798_v25 = vmov 1934713408   ;;  %v3108_v28 = vshrl.u32 %v765_v24, 7  ;;  %vm1442_vm4 = vcmask 1043456  }
  0x6a   : > { %2389 = vmatprep.subr.bf16.mxu0 %v2792_v2  ;;  %2391 = vmatprep.mubr.msk.bf16.mxu0 %vm2793_vm1, %v2792_v2  ;;  %v763_v23 = vunpack.c.l.s4 %v2797_v22  ;;  %v795_v26 = vunpack.c.l.s4 %v2798_v25  ;;  %s2800_s24 = smov 8   ;;  %s2801_s28 = smov 24   ;;  %vm1773_vm5 = vcmask 130048   ;;  %vm1775_vm6 = vcmask 195584  }
  0x6b   : > { %vm1985_vm7 = vcmask 523264   ;;  %p2343_p4 = scmp.ne.s32.totalorder %s2771_s19, 1 }
  0x6c   : > { %2398 = vmatpush3.bf16.msra.mxu1 %v2603_v4  ;;  %v764_v27 = vunpack.c.0.s8 %v763_v23  ;;  %v796_v31 = vunpack.c.0.s8 %v795_v26 }
  0x6d   : > { %2390 = vmatpush3.bf16.msra.mxu0 %v2604_v6  ;;  %2411 = vmatprep.subr.bf16.mxu1 %v2792_v2 }
  0x6e   : > { %2403 = vmatprep.subr.bf16.mxu0 %v2792_v2  ;;  %v3111_v32 = vsub.s32 %v764_v27, %v3108_v28  ;;  %v3114_v39 = vsub.s32 %v796_v31, %v3108_v28 }
  0x6f   : > { %2400 = vmatmul.mubr.msk.bf16.vlgmr.msra.gmra.mrb[0].mxu1 %vm576_vm2, %v552_v7 }
  0x70   : > { %2392 = vmatmul.mubr.msk.bf16.vlgmr.msra.gmra.mrb[0].mxu0 %vm576_vm2, %v552_v7  ;;  %2413 = vmatprep.mubr.msk.bf16.mxu1 %vm2793_vm1, %v2792_v2 }
  0x71   : > { %2407 = vmatprep.mubr.msk.bf16.mxu0 %vm2793_vm1, %v2792_v2  ;;  %2404 = vmatpush3.bf16.msra.mxu0 %v2605_v14 }
  0x72   : > { %2405 = vmatprep.subr.bf16.mxu0 %v2792_v2 }
  0x75   : > { %2406 = vmatpush3.bf16.msra.mxu0 %v2606_v21 }
  0x76   : > { %2417 = vmatprep.subr.bf16.mxu0 %v2792_v2 }
  0x78   : > { %2408 = vmatmul.mubr.msk.bf16.vlgmr.msra.gmra.mrb[4].mxu0 %vm576_vm2, %v552_v7 }
  0x79   : > { %2419 = vmatprep.mubr.msk.bf16.mxu0 %vm2793_vm1, %v2792_v2 }
 0x142   : > { %v679_v9 = vpop.f32.mrb[0].mxu1 }
 0x143   : > { %v680_v11 = vadd.f32 %v2289_v8, %v679_v9  ;;  %v2401_v12 = vpop.f32.mrb[1].mxu1  ;;  %v614_v13 = vpop.f32.mrb[0].mxu0 }
 0x144   : > { %v682_v15 = vpop.f32.mrb[2].mxu1  ;;  %v2393_v16 = vpop.f32.mrb[1].mxu0  ;;  %v615_v18 = vadd.f32 %v2280_v10, %v614_v13 }
 0x145   : > { %907 = vrot.lane.b32.xlu1 %v680_v11, %s2794_s0  ;;  %901 = vrot.lane.b32.xlu0 %v680_v11, %s2795_s3  ;;  %v2402_v17 = vpop.f32.mrb[3].mxu1  ;;  %v617_v19 = vpop.f32.mrb[2].mxu0 }
 0x146   : > { %v2394_v20 = vpop.f32.mrb[3].mxu0 }
 0x149   : > { %904 = vrot.lane.b32.xlu0 %v680_v11, %s2796_s30  ;;  %751 = vrot.lane.b32.xlu1 %v615_v18, %s2795_s3 }
 0x14d   : > { %754 = vrot.lane.b32.xlu0 %v615_v18, %s2796_s30  ;;  %757 = vrot.lane.b32.xlu1 %v615_v18, %s2794_s0 }
 0x1b7   : > { %v908_v29 = vpop.permute.xlu1 %907  ;;  %v902_v30 = vpop.permute.xlu0 %901 }
 0x1b8   : > { %v926_v33 = vcombine.low %v902_v30, %v908_v29  ;;  %v927_v34 = vcombine.high %v902_v30, %v908_v29 }
 0x1ba   : > { %v934_v40 = vrot.slane %v926_v33, %v3111_v32  ;;  %v941_v41 = vrot.slane %v927_v34, %v3111_v32 }
 0x1bb   : > { %v905_v35 = vpop.permute.xlu0 %904  ;;  %v752_v36 = vpop.permute.xlu1 %751 }
 0x1bc   : > { %v910_v37 = vcombine.low %v680_v11, %v905_v35  ;;  %v911_v38 = vcombine.high %v680_v11, %v905_v35 }
 0x1be   : > { %v918_v42 = vrot.slane %v910_v37, %v3111_v32  ;;  %v925_v43 = vrot.slane %v911_v38, %v3111_v32 }
 0x1bf   : > { %v755_v44 = vpop.permute.xlu0 %754  ;;  %v758_v45 = vpop.permute.xlu1 %757 }
 0x1c0   : > { %v942_v46 = vcombine.low %v918_v42, %v934_v40  ;;  %v943_v47 = vcombine.high %v918_v42, %v934_v40  ;;  %v958_v48 = vcombine.low %v925_v43, %v941_v41  ;;  %v959_v49 = vcombine.high %v925_v43, %v941_v41 }
 0x1c1   : > { %v760_v50 = vcombine.low %v615_v18, %v755_v44  ;;  %v761_v51 = vcombine.high %v615_v18, %v755_v44  ;;  %v776_v52 = vcombine.low %v752_v36, %v758_v45  ;;  %v777_v53 = vcombine.high %v752_v36, %v758_v45 }
 0x1c2   : > { %v950_v54 = vrot.slane %v942_v46, %v3114_v39  ;;  %v957_v55 = vrot.slane %v943_v47, %v3114_v39  ;;  %v966_v56 = vrot.slane %v958_v48, %v3114_v39  ;;  %v973_v57 = vrot.slane %v959_v49, %v3114_v39 }
 0x1c3   : > { %v768_v58 = vrot.slane %v760_v50, %v3111_v32  ;;  %v775_v59 = vrot.slane %v761_v51, %v3111_v32  ;;  %v784_v60 = vrot.slane %v776_v52, %v3111_v32  ;;  %v791_v61 = vrot.slane %v777_v53, %v3111_v32 }
 0x1c4   : > { %v978_v62 = vcombine.low %v950_v54, %v957_v55  ;;  %v2304_v63 = vcombine.high %v950_v54, %v957_v55  ;;  %v994_v0 = vcombine.low %v966_v56, %v973_v57  ;;  %v2305_v1 = vcombine.high %v966_v56, %v973_v57 }
 0x1c5   : > { %v792_v3 = vcombine.low %v768_v58, %v784_v60  ;;  %v793_v4 = vcombine.high %v768_v58, %v784_v60  ;;  %v808_v6 = vcombine.low %v775_v59, %v791_v61  ;;  %v809_v7 = vcombine.high %v775_v59, %v791_v61 }
 0x1c6   : > { %v985_v8 = vrot.slane %v978_v62, %v3111_v32  ;;  %v993_v9 = vrot.slane %v2304_v63, %v3111_v32  ;;  %v1001_v10 = vrot.slane %v994_v0, %v3111_v32  ;;  %v1009_v11 = vrot.slane %v2305_v1, %v3111_v32  ;;  %v744_v63 = vpop.f32.mrb[4].mxu0 }
 0x1c7   : > { %v800_v12 = vrot.slane %v792_v3, %v3114_v39  ;;  %v807_v13 = vrot.slane %v793_v4, %v3114_v39  ;;  %v816_v14 = vrot.slane %v808_v6, %v3114_v39  ;;  %v823_v15 = vrot.slane %v809_v7, %v3114_v39  ;;  %v2409_v0 = vpop.f32.mrb[5].mxu0  ;;  %v549_v4 = vld [vmem:[%s3418_s10] sm:$0x1] }
 0x1c8   : > { %v1010_v16 = vcombine.low %v985_v8, %v993_v9  ;;  %v1026_v17 = vcombine.low %v1001_v10, %v1009_v11  ;;  %v1011_v18 = vcombine.high %v985_v8, %v993_v9  ;;  %v1027_v19 = vcombine.high %v1001_v10, %v1009_v11  ;;  %v747_v1 = vpop.f32.mrb[6].mxu0 }
 0x1c9   : > { %v828_v20 = vcombine.low %v800_v12, %v807_v13  ;;  %v2302_v21 = vcombine.high %v800_v12, %v807_v13  ;;  %v844_v22 = vcombine.low %v816_v14, %v823_v15  ;;  %v2303_v23 = vcombine.high %v816_v14, %v823_v15  ;;  %v2410_v3 = vpop.f32.mrb[7].mxu0 }
 0x1ca   : > { %v1018_v24 = vrot.slane %v1010_v16, %v3114_v39  ;;  %v1034_v25 = vrot.slane %v1026_v17, %v3114_v39  ;;  %v1025_v34 = vrot.slane %v1011_v18, %v3114_v39  ;;  %v1041_v35 = vrot.slane %v1027_v19, %v3114_v39 }
 0x1cb   : > { %v835_v26 = vrot.slane %v828_v20, %v3111_v32  ;;  %v843_v27 = vrot.slane %v2302_v21, %v3111_v32  ;;  %v851_v29 = vrot.slane %v844_v22, %v3111_v32  ;;  %v859_v30 = vrot.slane %v2303_v23, %v3111_v32 }
 0x1cc   : > { %v1042_v31 = vcombine.low %v1018_v24, %v1034_v25  ;;  %v1043_v33 = vcombine.high %v1018_v24, %v1034_v25  ;;  %v1044_v45 = vcombine.low %v1025_v34, %v1041_v35  ;;  %v1045_v46 = vcombine.high %v1025_v34, %v1041_v35  ;;  %v2298_v35 = vld [vmem:[%s3034_s17 + $0x2] ss:$0 sm:$0xff] }
 0x1cd   : > { %v860_v36 = vcombine.low %v835_v26, %v843_v27  ;;  %v876_v37 = vcombine.low %v851_v29, %v859_v30  ;;  %v861_v47 = vcombine.high %v835_v26, %v843_v27  ;;  %v877_v48 = vcombine.high %v851_v29, %v859_v30 }
 0x1ce   : > { %v1046_v38 = vpack.c.bf16 %v1042_v31, %v1042_v31  ;;  %v1047_v40 = vpack.c.bf16 %v1043_v33, %v1043_v33  ;;  %v1048_v51 = vpack.c.bf16 %v1044_v45, %v1044_v45  ;;  %v1049_v52 = vpack.c.bf16 %v1045_v46, %v1045_v46 }
 0x1cf   : > { %v868_v41 = vrot.slane %v860_v36, %v3114_v39  ;;  %v884_v42 = vrot.slane %v876_v37, %v3114_v39  ;;  %v875_v55 = vrot.slane %v861_v47, %v3114_v39  ;;  %v891_v56 = vrot.slane %v877_v48, %v3114_v39 }
 0x1d0   : > { %v1211_v43 = vsel %vm1206_vm3, %v1046_v38, 0  ;;  %v1257_v44 = vsel %vm1206_vm3, %v1047_v40, 0  ;;  %v1303_v57 = vsel %vm1206_vm3, %v1048_v51, 0  ;;  %v1349_v58 = vsel %vm1206_vm3, %v1049_v52, 0 }
 0x1d1   : > { %2412 = vmatpush3.bf16.xpose.msra.mxu1 %v1211_v43  ;;  %2418 = vmatpush3.bf16.xpose.msra.mxu0 %v1257_v44  ;;  %v892_v49 = vcombine.low %v868_v41, %v884_v42  ;;  %v893_v50 = vcombine.high %v868_v41, %v884_v42  ;;  %v894_v59 = vcombine.low %v875_v55, %v891_v56  ;;  %v550_v6 = vsub.f32 1.0, %v549_v4 }
 0x1d2   : > { %2423 = vmatprep.subr.bf16.mxu1 %v2792_v2  ;;  %2429 = vmatprep.subr.bf16.mxu0 %v2792_v2  ;;  %v895_v60 = vcombine.high %v875_v55, %v891_v56  ;;  %v1203_v8 = vsub.s32 0, %v3108_v28  ;;  %v745_v36 = vadd.f32 %v2298_v35, %v744_v63 }
 0x1d3   : > { %v896_v53 = vpack.c.bf16 %v892_v49, %v892_v49  ;;  %v897_v54 = vpack.c.bf16 %v893_v50, %v893_v50  ;;  %v898_v61 = vpack.c.bf16 %v894_v59, %v894_v59  ;;  %v551_v7 = vmul.f32 -1e+09, %v550_v6 }
 0x1d4   : > { %v899_v62 = vpack.c.bf16 %v895_v60, %v895_v60 }
 0x1d5   : > { %v1204_v9 = vrot.slane %v551_v7, %v1203_v8 }
 0x1d8   : > { %2414 = vmatmul.mubr.msk.bf16.vlgmr.msra.gmra.mrb[4].mxu1 %vm1206_vm3, %v896_v53  ;;  %2420 = vmatmul.mubr.msk.bf16.vlgmr.msra.gmra.mrb[8].mxu0 %vm1206_vm3, %v897_v54 }
 0x1d9   : > { %2424 = vmatpush3.bf16.xpose.msra.mxu1 %v1303_v57  ;;  %2430 = vmatpush3.bf16.xpose.msra.mxu0 %v1349_v58 }
 0x1da   : > { %2425 = vmatprep.mubr.msk.bf16.mxu1 %vm2793_vm1, %v2792_v2  ;;  %2431 = vmatprep.mubr.msk.bf16.mxu0 %vm2793_vm1, %v2792_v2 }
 0x1db   : > { %2435 = vmatprep.subr.bf16.mxu1 %v2792_v2  ;;  %2441 = vmatprep.subr.bf16.mxu0 %v2792_v2 }
 0x1e0   : > { %2426 = vmatmul.mubr.msk.bf16.vlgmr.msra.gmra.mrb[8].mxu1 %vm1206_vm3, %v898_v61  ;;  %2432 = vmatmul.mubr.msk.bf16.vlgmr.msra.gmra.mrb[12].mxu0 %vm1206_vm3, %v899_v62 }
 0x1e1   : > { %2437 = vmatprep.mubr.msk.bf16.mxu1 %vm2793_vm1, %v2792_v2  ;;  %2443 = vmatprep.mubr.msk.bf16.mxu0 %vm2793_vm1, %v2792_v2 }
 0x2ab   : > { %v1247_v10 = vpop.f32.mrb[4].mxu1  ;;  %v1293_v11 = vpop.f32.mrb[8].mxu0 }
 0x2ac   : > { %v1248_v12 = vadd.f32 %v1247_v10, %v1204_v9  ;;  %v1294_v13 = vadd.f32 %v1293_v11, %v1204_v9  ;;  %v2415_v14 = vpop.f32.mrb[5].mxu1  ;;  %v2421_v15 = vpop.f32.mrb[9].mxu0 }
 0x2ad   : > { %v1250_v16 = vpop.f32.mrb[6].mxu1  ;;  %v1296_v17 = vpop.f32.mrb[10].mxu0 }
 0x2ae   : > { %v2416_v18 = vpop.f32.mrb[7].mxu1  ;;  %v2422_v19 = vpop.f32.mrb[11].mxu0  ;;  %v1391_v20 = vsel %vm1206_vm3, %v1248_v12, -inf  ;;  %v1394_v21 = vsel %vm1206_vm3, %v1294_v13, -inf }
 0x2af   : > { %1392 = vmax.xlane.f32.xlu0 %v1391_v20  ;;  %1395 = vmax.xlane.f32.xlu1 %v1394_v21 }
 0x2b3   : > { %v1339_v22 = vpop.f32.mrb[8].mxu1  ;;  %v1385_v28 = vpop.f32.mrb[12].mxu0 }
 0x2b4   : > { %v1340_v23 = vadd.f32 %v1339_v22, %v1204_v9  ;;  %v2427_v24 = vpop.f32.mrb[9].mxu1  ;;  %v2433_v25 = vpop.f32.mrb[13].mxu0  ;;  %v1386_v29 = vadd.f32 %v1385_v28, %v1204_v9 }
 0x2b5   : > { %v1342_v26 = vpop.f32.mrb[10].mxu1  ;;  %v1388_v27 = vpop.f32.mrb[14].mxu0 }
 0x2b6   : > { %v2428_v30 = vpop.f32.mrb[11].mxu1  ;;  %v2434_v31 = vpop.f32.mrb[15].mxu0  ;;  %v1397_v33 = vsel %vm1206_vm3, %v1340_v23, -inf  ;;  %v1400_v34 = vsel %vm1206_vm3, %v1386_v29, -inf }
 0x2b7   : > { %1398 = vmax.xlane.f32.xlu0 %v1397_v33 }
 0x2bb   : > { %1401 = vmax.xlane.f32.xlu0 %v1400_v34 }
 0x2c0   : > { %1051 = vrot.lane.b32.xlu1 %v745_v36, %s2795_s3 }
 0x33c   : > { %v1393_v37 = vpop.xlane.xlu0 %1392  ;;  %v1396_v38 = vpop.xlane.xlu1 %1395 }
 0x33d   : > { %v1403_v40 = vsub.f32 %v1248_v12, %v1393_v37  ;;  %v1404_v41 = vsub.f32 %v1294_v13, %v1396_v38 }
 0x33f   : > { %v1407_v42 = vmul.f32 1.442695, %v1403_v40  ;;  %v1409_v43 = vmul.f32 1.442695, %v1404_v41 }
 0x340   : > { %v1052_v58 = vpop.permute.xlu1 %1051 }
 0x341   : > { %2615 = vpow2.f32 %v1407_v42 }
 0x342   : > { %2617 = vpow2.f32 %v1409_v43 }
 0x344   : > { %v1399_v48 = vpop.xlane.xlu0 %1398 }
 0x345   : > { %v1405_v50 = vsub.f32 %v1340_v23, %v1399_v48 }
 0x347   : > { %v1411_v52 = vmul.f32 1.442695, %v1405_v50 }
 0x348   : > { %v1402_v49 = vpop.xlane.xlu0 %1401 }
 0x349   : > { %v1406_v51 = vsub.f32 %v1386_v29, %v1402_v49  ;;  %2619 = vpow2.f32 %v1411_v52 }
 0x34b   : > { %v3180_v44 = vpop.eup %2615  ;;  %v1413_v53 = vmul.f32 1.442695, %v1406_v51 }
 0x34c   : > { %v3182_v45 = vpop.eup %2617  ;;  %v1415_v46 = vsel %vm1206_vm3, %v3180_v44, 0.0 }
 0x34d   : > { %1416 = vadd.xlane.f32.xlu1 %v1415_v46  ;;  %v1418_v47 = vsel %vm1206_vm3, %v3182_v45, 0.0  ;;  %2621 = vpow2.f32 %v1413_v53 }
 0x34e   : > { %1419 = vadd.xlane.f32.xlu0 %v1418_v47 }
 0x353   : > { %v3190_v54 = vpop.eup %2619 }
 0x354   : > { %v1421_v56 = vsel %vm1206_vm3, %v3190_v54, 0.0 }
 0x357   : > { %v3192_v55 = vpop.eup %2621 }
 0x358   : > { %v1424_v57 = vsel %vm1206_vm3, %v3192_v55, 0.0 }
 0x35e   : > { %1057 = vrot.lane.b32.xlu1 %v745_v36, %s2794_s0 }
 0x364   : > { %1054 = vrot.lane.b32.xlu0 %v745_v36, %s2796_s30 }
 0x382   : > { %1422 = vadd.xlane.f32.xlu1 %v1421_v56 }
 0x383   : > { %1425 = vadd.xlane.f32.xlu0 %v1424_v57 }
 0x3da   : > { %v1417_v59 = vpop.xlane.xlu1 %1416 }
 0x3db   : > { %v1420_v60 = vpop.xlane.xlu0 %1419  ;;  %2623 = vrcp.f32 %v1417_v59 }
 0x3dc   : > { %2625 = vrcp.f32 %v1420_v60 }
 0x3de   : > { %v1058_v61 = vpop.permute.xlu1 %1057 }
 0x3df   : > { %v1076_v62 = vcombine.low %v1052_v58, %v1058_v61  ;;  %v1077_v63 = vcombine.high %v1052_v58, %v1058_v61  ;;  %v1055_v0 = vpop.permute.xlu0 %1054 }
 0x3e0   : > { %v1060_v1 = vcombine.low %v745_v36, %v1055_v0  ;;  %v1061_v3 = vcombine.high %v745_v36, %v1055_v0 }
 0x3e1   : > { %v1084_v4 = vrot.slane %v1076_v62, %v3111_v32  ;;  %v1091_v6 = vrot.slane %v1077_v63, %v3111_v32 }
 0x3e2   : > { %v1068_v7 = vrot.slane %v1060_v1, %v3111_v32  ;;  %v1075_v8 = vrot.slane %v1061_v3, %v3111_v32 }
 0x3e4   : > { %v1092_v9 = vcombine.low %v1068_v7, %v1084_v4  ;;  %v1093_v10 = vcombine.high %v1068_v7, %v1084_v4  ;;  %v1108_v11 = vcombine.low %v1075_v8, %v1091_v6  ;;  %v1109_v12 = vcombine.high %v1075_v8, %v1091_v6 }
 0x3e5   : > { %v2624_v31 = vpop.eup %2623 }
 0x3e6   : > { %v1100_v13 = vrot.slane %v1092_v9, %v3114_v39  ;;  %v1107_v14 = vrot.slane %v1093_v10, %v3114_v39  ;;  %v1116_v15 = vrot.slane %v1108_v11, %v3114_v39  ;;  %v1123_v16 = vrot.slane %v1109_v12, %v3114_v39  ;;  %v2626_v35 = vpop.eup %2625 }
 0x3e7   : > { %v1428_v41 = vmul.f32 %v2624_v31, %v3180_v44  ;;  %v1430_v42 = vmul.f32 %v2626_v35, %v3182_v45 }
 0x3e8   : > { %v1128_v17 = vcombine.low %v1100_v13, %v1107_v14  ;;  %v2306_v18 = vcombine.high %v1100_v13, %v1107_v14  ;;  %v1144_v19 = vcombine.low %v1116_v15, %v1123_v16  ;;  %v2307_v20 = vcombine.high %v1116_v15, %v1123_v16 }
 0x3e9   : > { %v1435_v51 = vpack.c.bf16 %v1428_v41, %v1428_v41  ;;  %v1436_v52 = vpack.c.bf16 %v1430_v42, %v1430_v42 }
 0x3ea   : > { %v1135_v21 = vrot.slane %v1128_v17, %v3111_v32  ;;  %v1143_v22 = vrot.slane %v2306_v18, %v3111_v32  ;;  %v1151_v28 = vrot.slane %v1144_v19, %v3111_v32  ;;  %v1159_v23 = vrot.slane %v2307_v20, %v3111_v32 }
 0x3ec   : > { %v1160_v24 = vcombine.low %v1135_v21, %v1143_v22  ;;  %v1161_v25 = vcombine.high %v1135_v21, %v1143_v22  ;;  %v1176_v26 = vcombine.low %v1151_v28, %v1159_v23  ;;  %v1177_v27 = vcombine.high %v1151_v28, %v1159_v23 }
 0x3ee   : > { %v1168_v29 = vrot.slane %v1160_v24, %v3114_v39  ;;  %v1175_v30 = vrot.slane %v1161_v25, %v3114_v39  ;;  %v1184_v33 = vrot.slane %v1176_v26, %v3114_v39  ;;  %v1191_v34 = vrot.slane %v1177_v27, %v3114_v39  ;;  %v2607_v26 = vld [vmem:[%s3003_s27 + $0x30] sm:$0xff]  }
 0x3f0   : > { %v1192_v36 = vcombine.low %v1168_v29, %v1184_v33  ;;  %v1193_v37 = vcombine.high %v1168_v29, %v1184_v33  ;;  %v1194_v38 = vcombine.low %v1175_v30, %v1191_v34  ;;  %v1195_v40 = vcombine.high %v1175_v30, %v1191_v34 }
 0x3f2   : > { %v1196_v43 = vpack.c.bf16 %v1192_v36, %v1192_v36  ;;  %v1197_v46 = vpack.c.bf16 %v1193_v37, %v1193_v37  ;;  %v1198_v49 = vpack.c.bf16 %v1194_v38, %v1194_v38  ;;  %v1199_v50 = vpack.c.bf16 %v1195_v40, %v1195_v40  ;;  %v2608_v37 = vld [vmem:[%s3003_s27 + $0x38] sm:$0xff]   ;;  %s2799_s27 = smov 16  }
 0x3f4   : > { %v1444_v47 = vsel %vm1442_vm4, %v1196_v43, 0  ;;  %v1490_v48 = vsel %vm1442_vm4, %v1197_v46, 0  ;;  %v1536_v44 = vsel %vm1442_vm4, %v1198_v49, 0  ;;  %v1582_v45 = vsel %vm1442_vm4, %v1199_v50, 0 }
 0x3f5   : > { %2436 = vmatpush3.bf16.msra.mxu1 %v1444_v47  ;;  %2442 = vmatpush3.bf16.msra.mxu0 %v1490_v48 }
 0x3f6   : > { %2447 = vmatprep.subr.bf16.mxu1 %v2792_v2  ;;  %2453 = vmatprep.subr.bf16.mxu0 %v2792_v2 }
 0x3f8   : > { %2438 = vmatmul.mubr.msk.bf16.vlgmr.msra.gmra.mrb[12].mxu1 %vm1206_vm3, %v1435_v51  ;;  %2444 = vmatmul.mubr.msk.bf16.vlgmr.msra.gmra.mrb[16].mxu0 %vm1206_vm3, %v1436_v52 }
 0x3f9   : > { %2448 = vmatpush3.bf16.msra.mxu1 %v1536_v44  ;;  %2454 = vmatpush3.bf16.msra.mxu0 %v1582_v45 }
 0x3fa   : > { %2449 = vmatprep.mubr.msk.bf16.mxu1 %vm2793_vm1, %v2792_v2  ;;  %2455 = vmatprep.mubr.msk.bf16.mxu0 %vm2793_vm1, %v2792_v2 }
 0x3fb   : > { %2459 = vmatprep.subr.bf16.mxu1 %v2792_v2  ;;  %2467 = vmatprep.subr.bf16.mxu0 %v2792_v2 }
 0x40f   : > { %v1423_v53 = vpop.xlane.xlu1 %1422 }
 0x410   : > { %2627 = vrcp.f32 %v1423_v53  ;;  %v1426_v56 = vpop.xlane.xlu0 %1425 }
 0x411   : > { %2629 = vrcp.f32 %v1426_v56 }
 0x41a   : > { %v2628_v57 = vpop.eup %2627 }
 0x41b   : > { %v2630_v58 = vpop.eup %2629  ;;  %v1432_v59 = vmul.f32 %v2628_v57, %v3190_v54 }
 0x41c   : > { %v1434_v60 = vmul.f32 %v2630_v58, %v3192_v55 }
 0x41d   : > { %v1437_v61 = vpack.c.bf16 %v1432_v59, %v1432_v59 }
 0x41e   : > { %v1438_v62 = vpack.c.bf16 %v1434_v60, %v1434_v60 }
 0x41f   : > { %2450 = vmatmul.mubr.msk.bf16.vlgmr.msra.gmra.mrb[16].mxu1 %vm1206_vm3, %v1437_v61 }
 0x420   : > { %2456 = vmatmul.mubr.msk.bf16.vlgmr.msra.gmra.mrb[20].mxu0 %vm1206_vm3, %v1438_v62  ;;  %2463 = vmatprep.mubr.msk.bf16.mxu1 %vm2793_vm1, %v2792_v2  ;;  %v2323_v62 = vld [vmem:[%s3034_s17 + $0x3] ss:$0 sm:$0xff] }
 0x421   : > { %2471 = vmatprep.mubr.msk.bf16.mxu0 %vm2793_vm1, %v2792_v2  ;;  %2460 = vmatpush3.bf16.msra.mxu1 %v2607_v26 }
 0x422   : > { %2461 = vmatprep.subr.bf16.mxu1 %v2792_v2 }
 0x425   : > { %2462 = vmatpush3.bf16.msra.mxu1 %v2608_v37 }
 0x426   : > { %2475 = vmatprep.subr.bf16.mxu1 %v2792_v2 }
 0x4cb   : > { %v1480_v63 = vpop.f32.mrb[12].mxu1  ;;  %v1526_v0 = vpop.f32.mrb[16].mxu0 }
 0x4cc   : > { %v2439_v1 = vpop.f32.mrb[13].mxu1  ;;  %v2445_v3 = vpop.f32.mrb[17].mxu0 }
 0x4cd   : > { %v1483_v4 = vpop.f32.mrb[14].mxu1  ;;  %v1529_v54 = vpop.f32.mrb[18].mxu0 }
 0x4ce   : > { %v2440_v6 = vpop.f32.mrb[15].mxu1  ;;  %v2446_v55 = vpop.f32.mrb[19].mxu0 }
 0x4f2   : > { %v1572_v7 = vpop.f32.mrb[16].mxu1 }
 0x4f3   : > { %v1624_v8 = vcombine.low %v1480_v63, %v1572_v7  ;;  %v1625_v9 = vcombine.high %v1480_v63, %v1572_v7  ;;  %v1618_v10 = vpop.f32.mrb[20].mxu0  ;;  %v2451_v11 = vpop.f32.mrb[17].mxu1 }
 0x4f4   : > { %v1640_v12 = vcombine.low %v1526_v0, %v1618_v10  ;;  %v1641_v13 = vcombine.high %v1526_v0, %v1618_v10  ;;  %v2457_v14 = vpop.f32.mrb[21].mxu0  ;;  %v1575_v15 = vpop.f32.mrb[18].mxu1  ;;  %v2609_v11 = vld [vmem:[%s3040_s23] sm:$0xff]  }
 0x4f5   : > { %v1632_v16 = vrot.slane %v1624_v8, %v3111_v32  ;;  %v1639_v17 = vrot.slane %v1625_v9, %v3111_v32  ;;  %v1621_v18 = vpop.f32.mrb[22].mxu0  ;;  %v2452_v19 = vpop.f32.mrb[19].mxu1  ;;  %2468 = vmatpush3.bf16.msra.mxu0 %v2609_v11 }
 0x4f6   : > { %v1648_v20 = vrot.slane %v1640_v12, %v3111_v32  ;;  %v1655_v21 = vrot.slane %v1641_v13, %v3111_v32  ;;  %v2458_v22 = vpop.f32.mrb[23].mxu0  ;;  %v2610_v12 = vld [vmem:[%s3040_s23 + $0x8] sm:$0xff]   ;;  %2469 = vmatprep.subr.bf16.mxu0 %v2792_v2  ;;  %v2327_v18 = vld [vmem:[%s3060_s13] ss:$0 sm:$0xff] }
 0x4f7   : > { %v2612_v13 = vld [vmem:[%s3054_s2 + $0x8] sm:$0xff]  }
 0x4f8   : > { %v1656_v28 = vcombine.low %v1632_v16, %v1648_v20  ;;  %v1657_v23 = vcombine.high %v1632_v16, %v1648_v20  ;;  %v1672_v24 = vcombine.low %v1639_v17, %v1655_v21  ;;  %v1673_v25 = vcombine.high %v1639_v17, %v1655_v21  ;;  %v2328_v20 = vld [vmem:[%s3065_s16] ss:$0 sm:$0xff] }
 0x4f9   : > { %2470 = vmatpush3.bf16.msra.mxu0 %v2610_v12 }
 0x4fa   : > { %v1664_v27 = vrot.slane %v1656_v28, %v3114_v39  ;;  %v1671_v29 = vrot.slane %v1657_v23, %v3114_v39  ;;  %v1680_v30 = vrot.slane %v1672_v24, %v3114_v39  ;;  %v1687_v31 = vrot.slane %v1673_v25, %v3114_v39  ;;  %v2613_v23 = vld [vmem:[%s3054_s2 + $0x10] sm:$0xff]   ;;  %v2614_v24 = vld [vmem:[%s3054_s2 + $0x18] sm:$0xff]   ;;  %v2329_v25 = vld [vmem:[%s3419_s18] ss:$0 sm:$0xff] }
 0x4fc   : > { %v1692_v33 = vcombine.low %v1664_v27, %v1671_v29  ;;  %v2316_v34 = vcombine.high %v1664_v27, %v1671_v29  ;;  %v1708_v35 = vcombine.low %v1680_v30, %v1687_v31  ;;  %v2317_v36 = vcombine.high %v1680_v30, %v1687_v31 }
 0x4fe   : > { %v1699_v38 = vrot.slane %v1692_v33, %v3111_v32  ;;  %v1707_v40 = vrot.slane %v2316_v34, %v3111_v32  ;;  %v1715_v41 = vrot.slane %v1708_v35, %v3111_v32  ;;  %v1723_v42 = vrot.slane %v2317_v36, %v3111_v32 }
 0x500   : > { %v1725_v43 = vcombine.high %v1699_v38, %v1707_v40  ;;  %v1741_v46 = vcombine.high %v1715_v41, %v1723_v42  ;;  %v1724_v47 = vcombine.low %v1699_v38, %v1707_v40  ;;  %v1740_v48 = vcombine.low %v1715_v41, %v1723_v42 }
 0x502   : > { %v1739_v49 = vrot.slane %v1725_v43, %v3114_v39  ;;  %v1755_v50 = vrot.slane %v1741_v46, %v3114_v39  ;;  %v1732_v51 = vrot.slane %v1724_v47, %v3114_v39  ;;  %v1748_v52 = vrot.slane %v1740_v48, %v3114_v39 }
 0x504   : > { %v1758_v44 = vcombine.low %v1739_v49, %v1755_v50  ;;  %v1757_v45 = vcombine.high %v1732_v51, %v1748_v52  ;;  %v1759_v53 = vcombine.high %v1739_v49, %v1755_v50  ;;  %v1756_v56 = vcombine.low %v1732_v51, %v1748_v52 }
 0x506   : > { %1765 = vrot.lane.b32.xlu1 %v1758_v44, %s2799_s27  ;;  %1761 = vrot.lane.b32.xlu0 %v1757_v45, %s2800_s24  ;;  %v2341_v45 = vld [vmem:[%s3060_s13 + $0x1] ss:$0 sm:$0xff] }
 0x50a   : > { %1769 = vrot.lane.b32.xlu1 %v1759_v53, %s2801_s28 }
 0x578   : > { %v1766_v32 = vpop.permute.xlu1 %1765  ;;  %v1762_v57 = vpop.permute.xlu0 %1761 }
 0x579   : > { %v1772_v58 = vsel %vm1206_vm3, %v1756_v56, %v1762_v57  ;;  %v2342_v56 = vld [vmem:[%s3065_s16 + $0x1] ss:$0 sm:$0xff] }
 0x57a   : > { %v1774_v60 = vsel %vm1773_vm5, %v1772_v58, %v1766_v32 }
 0x57c   : > { %v1770_v59 = vpop.permute.xlu1 %1769 }
 0x57d   : > { %v1776_v39 = vsel %vm1775_vm6, %v1774_v60, %v1770_v59 }
 0x57e   : > { %v1777_v61 = vpack.c.bf16 %v1776_v39, %v1776_v39 }
 0x580   : > { %2464 = vmatmul.mubr.msk.bf16.vlgmr.msra.gmra.mrb[20].mxu1 %vm576_vm2, %v1777_v61 }
 0x581   : > { %2483 = vmatprep.mubr.msk.bf16.mxu1 %vm2793_vm1, %v2792_v2 }
 0x653   : > { %v1840_v63 = vpop.f32.mrb[20].mxu1 }
 0x654   : > { %v1841_v0 = vadd.f32 %v2323_v62, %v1840_v63  ;;  %v2465_v1 = vpop.f32.mrb[21].mxu1 }
 0x655   : > { %v1843_v3 = vpop.f32.mrb[22].mxu1 }
 0x656   : > { %v2466_v4 = vpop.f32.mrb[23].mxu1  ;;  %v1846_v54 = vadd.f32 %v1841_v0, %v3077_v5  ;;  %v2611_v5 = vld [vmem:[%s3054_s2] sm:$0xff]  }
 0x657   : > { %2476 = vmatpush3.bf16.msra.mxu1 %v2611_v5 }
 0x658   : > { %v1849_v6 = vsel %vm576_vm2, %v1846_v54, 0.0  ;;  %2477 = vmatprep.subr.bf16.mxu1 %v2792_v2 }
 0x659   : > { %1850 = vadd.xlane.f32.xlu0 %v1849_v6 }
 0x65b   : > { %2478 = vmatpush3.bf16.msra.mxu1 %v2612_v13 }
 0x65c   : > { %2479 = vmatprep.subr.bf16.mxu1 %v2792_v2 }
 0x65f   : > { %2480 = vmatpush3.bf16.msra.mxu1 %v2613_v23 }
 0x660   : > { %2481 = vmatprep.subr.bf16.mxu1 %v2792_v2  ;;  %v2333_v2 = vld [vmem:[%s531_s12] ss:$0 sm:$0xff] }
 0x663   : > { %2482 = vmatpush3.bf16.msra.mxu1 %v2614_v24 }
 0x6e6   : > { %v1851_v55 = vpop.xlane.xlu0 %1850 }
 0x6e7   : > { %v1853_v7 = vmul.f32 0.03125, %v1851_v55 }
 0x6e9   : > { %v1854_v8 = vsub.f32 %v1846_v54, %v1853_v7 }
 0x6eb   : > { %v1855_v9 = vmul.f32 %v1854_v8, %v1854_v8 }
 0x6ed   : > { %v1856_v10 = vsel %vm576_vm2, %v1855_v9, 0.0 }
 0x6ee   : > { %1857 = vadd.xlane.f32.xlu1 %v1856_v10 }
 0x77b   : > { %v1858_v14 = vpop.xlane.xlu1 %1857 }
 0x77c   : > { %v1859_v15 = vmul.f32 0.03125, %v1858_v14 }
 0x77e   : > { %v1860_v16 = vadd.f32 1e-05, %v1859_v15 }
 0x780   : > { %2631 = vrsqrt.f32 %v1860_v16 }
 0x78a   : > { %v2632_v17 = vpop.eup %2631 }
 0x78b   : > { %v1862_v19 = vmul.f32 %v2632_v17, %v1854_v8 }
 0x78d   : > { %v1869_v21 = vmul.f32 %v2327_v18, %v1862_v19 }
 0x78f   : > { %v1876_v22 = vadd.f32 %v2328_v20, %v1869_v21 }
 0x791   : > { %v1877_v28 = vpack.c.bf16 %v1876_v22, %v1876_v22 }
 0x793   : > { %2472 = vmatmul.mubr.msk.bf16.vlgmr.msra.gmra.mrb[24].mxu0 %vm576_vm2, %v1877_v28 }
 0x866   : > { %v1938_v26 = vpop.f32.mrb[24].mxu0 }
 0x867   : > { %v1939_v27 = vadd.f32 %v2329_v25, %v1938_v26  ;;  %v2473_v29 = vpop.f32.mrb[25].mxu0 }
 0x868   : > { %v1941_v30 = vpop.f32.mrb[26].mxu0 }
 0x869   : > { %v1944_v31 = vmax.f32 %v1939_v27, 0.0  ;;  %v2474_v33 = vpop.f32.mrb[27].mxu0 }
 0x86b   : > { %v1945_v34 = vpack.c.bf16 %v1944_v31, %v1944_v31 }
 0x86d   : > { %2484 = vmatmul.mubr.msk.bf16.vlgmr.msra.gmra.mrb[24].mxu1 %vm1985_vm7, %v1945_v34 }
 0x940   : > { %v2023_v35 = vpop.f32.mrb[24].mxu1 }
 0x941   : > { %v2024_v36 = vadd.f32 %v2333_v2, %v2023_v35  ;;  %v2485_v37 = vpop.f32.mrb[25].mxu1 }
 0x942   : > { %v2026_v38 = vpop.f32.mrb[26].mxu1 }
 0x943   : > { %v2486_v40 = vpop.f32.mrb[27].mxu1  ;;  %v2029_v41 = vadd.f32 %v2024_v36, %v1876_v22 }
 0x945   : > { %v2034_v42 = vsel %vm576_vm2, %v2029_v41, 0.0 }
 0x946   : > { %2035 = vadd.xlane.f32.xlu0 %v2034_v42 }
 0x9d3   : > { %v2036_v43 = vpop.xlane.xlu0 %2035 }
 0x9d4   : > { %v2037_v46 = vmul.f32 0.03125, %v2036_v43 }
 0x9d6   : > { %v2038_v47 = vsub.f32 %v2029_v41, %v2037_v46 }
 0x9d8   : > { %v2039_v48 = vmul.f32 %v2038_v47, %v2038_v47 }
 0x9da   : > { %v2040_v49 = vsel %vm576_vm2, %v2039_v48, 0.0 }
 0x9db   : > { %2041 = vadd.xlane.f32.xlu0 %v2040_v49 }
 0xa68   : > { %v2042_v50 = vpop.xlane.xlu0 %2041 }
 0xa69   : > { %v2043_v51 = vmul.f32 0.03125, %v2042_v50 }
 0xa6b   : > { %v2044_v52 = vadd.f32 1e-05, %v2043_v51 }
 0xa6d   : > { %2633 = vrsqrt.f32 %v2044_v52 }
 0xa77   : > { %v2634_v44 = vpop.eup %2633 }
 0xa78   : > { %v2046_v53 = vmul.f32 %v2634_v44, %v2038_v47  ;;  %2065 = sbr.rel (%p2343_p4) target bundleno = 2687 (0xa7f), region = 72 }
 0xa7a   : > { %v2053_v32 = vmul.f32 %v2341_v45, %v2046_v53 }
 0xa7c   : > { %v2060_v57 = vadd.f32 %v2342_v56, %v2053_v32 }
 0xa7e   : > { %2061 = vst.msk [vmem:[#allocation2] sm:$0xff] %vm576_vm2, %v2060_v57  ;;  %2066 = vst.msk [vmem:[%s504_s26] sm:$0xff] (!%p2343_p4), %vm576_vm2, %v2060_v57 }
 0xa7f PF: > { %s3420_s25 = sld [smem:[#allocation10_spill]]  ;;  %s3421_s12 = sld [smem:[#allocation21_spill]] }
 0xa80   : > { %s2345_s2 = sshll.u32 %s2775_s20, 7  ;;  %s3422_s14 = sld [smem:[#allocation27_spill]] }
 0xa81   : > { %s2081_s3 = sshll.u32 %s504_s26, 4  ;;  %s2802_s9 = smov [#allocation6]   ;;  %s2082_s3 = int_to_ptr.vmem [resolvable:$true] %s2081_s3 }
 0xa82   : > { %s2665_s22 = scalar_lea.vmem %s2082_s3, 128  ;;  %s2669_s10 = sshll.u32 %s2802_s9, 4  ;;  %s2670_s10 = int_to_ptr.vmem [resolvable:$false] %s2669_s10 }
 0xa83   : > { %p2666_p0 = scmp.ne.s32.totalorder %s2082_s3, %s2665_s22  ;;  %s2671_s27 = scalar_lea.vmem %s2670_s10, 256 }
 0xa84   : > { %p2672_p3 = scmp.lt.s32.totalorder %s2082_s3, %s2670_s10  ;;  %p2673_p10 = scmp.lt.s32.totalorder %s2671_s27, %s2665_s22 }
 0xa85   : > { %s3424_s19 = sand.u32 1, %s3420_s25   ;;  %p3425_p1 = scmp.ne.s32.totalorder %s3421_s12, 0 }
 0xa86   : > { %s3423_s0 = smov %s3422_s14  ;;  %s3302_s16 = scalar_lea.hbm %s3422_s14, %s2345_s2 }
 0xa87   : > { %s2068_s30 = scalar_lea.sflag [#allocation5], %s3424_s19  ;;  %p2667_p5 = pnand %p2666_p0, %p3425_p1 }
 0xa88   : > { %p2674_p11 = por %p2673_p10, %p2672_p3 }
 0xa89   : > { %p2668_p7 = pneg %p2667_p5 }
 0xa8b   : > { %p2675_p6 = pnand %p2674_p11, %p2668_p7 }
 0xa8d   : > { %2678 = shalt.err (!%p2675_p6)
}
 0xa8e   : > { %s2679_s20 = scalar_lea.hbm %s3302_s16, 128  ;;  %s2683_s24 = scalar_lea.hbm %s3423_s0, 256 }
 0xa8f   : > { %p2680_p9 = scmp.ne.s32.totalorder %s3302_s16, %s2679_s20  ;;  %p2684_p2 = scmp.lt.u32.totalorder %s3302_s16, %s3423_s0 }
 0xa90   : > { %p2685_p8 = scmp.lt.u32.totalorder %s2683_s24, %s2679_s20  ;;  %p2687_p0 = scmp.lt.u32.totalorder %s2679_s20, %s3302_s16 }
 0xa91   : > { %p2681_p13 = pnand %p2680_p9, %p3425_p1 }
 0xa92   : > { %p2686_p4 = por %p2685_p8, %p2684_p2 }
 0xa93   : > { %p2682_p12 = pneg %p2681_p13 }
 0xa94   : > { %p2688_p5 = por %p2687_p0, %p2686_p4 }
 0xa96   : > { %p2689_p7 = pnand %p2688_p5, %p2682_p12 }
 0xa98   : > { %2692 = shalt.err (!%p2689_p7)
}
 0xa99   : > { %2489 = dma.vmem_to_hbm [thread:$0]  (%p3425_p1), %s2082_s3, 128, %s3302_s16, %s2068_s30  }
 0xa9a PF: > { %s3426_s23 = sld [smem:[#allocation16_spill]]  ;;  %s3427_s18 = sld [smem:[#allocation9_spill]] }
 0xa9b   : > { %s3428_s21 = sld [smem:[#allocation22_spill]] }
 0xaa0   : > { %p2500_p3 = scmp.ge.s32.totalorder %s3426_s23, 2  ;;  %s2093_s15 = sand.u32 1, %s3427_s18  }
 0xaa1   : > { %p3429_p10 = scmp.ne.s32.totalorder %s3428_s21, 0  ;;  %s2094_s25 = scalar_lea.sflag [#allocation5], %s2093_s15 }
 0xaa3   : > { %p2496_p11 = pnand %p2500_p3, %p3429_p10 }
 0xaa5   : > { %2742 = dma.done.wait (!%p2496_p11), %s2094_s25, 128  }
 0xaa6   : > { %2744 = vsyncadd (!%p2496_p11), %s2094_s25, 4294967168  ;;  %s26_s23 = sadd.s32 1, %s3426_s23   ;;  %s3430_s13 = sld [smem:[#allocation10_spill]] }
 0xaa7   : > { %p23_p6 = scmp.ge.s32.totalorder %s26_s23, 6   ;;  %s3431_s14 = sld [smem:[#allocation11_spill]] }
 0xaa8   : > { %s3432_s15 = sld [smem:[#allocation20_spill]]  ;;  %s3433_s16 = sld [smem:[#allocation12_spill]] }
 0xaa9   : > { %s3434_s17 = sld [smem:[#allocation13_spill]]  ;;  %s3435_s18 = sld [smem:[#allocation19_spill]] }
 0xaaa   : > { %s3436_s19 = sld [smem:[#allocation14_spill]]  ;;  %s3437_s20 = sld [smem:[#allocation15_spill]] }
 0xaab   : > { %s3438_s21 = sld [smem:[#allocation17_spill]]  ;;  %s3439_s22 = sld [smem:[#allocation18_spill]] }
 0xaac   :  { %25 = sbr.rel (!%p23_p6) target bundleno = 15 (0xf), region = 148 }
 0xab3   :  { %2099 = vsyncpa [#allocation4], 1 }
 0xab4   :  { %2101 = vsyncpa [#allocation4 + $0x1], 1 }
 0xab5   :  { %2102 = vsyncpa [#allocation5], 1 }
 0xab6   :  { %2104 = vsyncpa [#allocation5 + $0x1], 1 }

</bundles_post_ra>
